<compile_context>
chip_gen: v7x
topology: tpu7x:2x2x1
jax: 0.10.0
libtpu: 0.0.40
codegen_flags: <defaults>
</compile_context>

<pallas_src>
import jax
import jax.numpy as jnp
from jax import lax
from jax.experimental import pallas as pl
from jax.experimental.pallas import tpu as pltpu


# -----------------------------------------------------------------------------
# Fused kernel: pre-GNN -> biaffine attn -> masked softmax + attend + gated
# projection -> post-GNN, single grid step for the whole batch & both graphs.
# -----------------------------------------------------------------------------
def fused_graph_forward(x_1, x_2, mask_1, mask_2, a_norm_1, a_norm_2,
                        pre, w_biaff, w_proj, b_proj, post):
    B, N, D = x_1.shape
    S = 2 * B * N                       # stacked rows: [b0g1, b0g2, b1g1, b1g2]
    (pw1, pb1), (pw2, pb2) = pre
    (qw1, qb1), (qw2, qb2) = post

    # ---- weight slab (8, D, D) ------------------------------------------------
    wbc = w_biaff[:D, :D]                                   # biaffine core
    w0, w1, w2, w3 = (w_proj[i * D:(i + 1) * D] for i in range(4))
    w_slab = jnp.stack([pw1, pw2, qw1, qw2, wbc, w0 + w2, w1 - w2, w3])

    # ---- bias / rank-1-term slab (8, D) ---------------------------------------
    wbr = w_biaff[:D, D]                                    # (D,) h1-side bias
    wbq = w_biaff[D, :D]                                    # (D,) h2-side bias
    wbs = w_biaff[D, D]                                     # ()  scalar bias
    b_slab = jnp.stack([pb1, pb2, qb1, qb2, b_proj, wbr, wbq,
                        jnp.zeros((D,), jnp.float32).at[0].set(wbs)])

    # ---- sublane-stacked node features & block-diagonal adjacency -------------
    x_all = jnp.concatenate([x_1[:, None], x_2[:, None]], axis=1).reshape(S, D)
    a_big = jnp.zeros((S, S), jnp.float32)
    for k in range(2 * B):
        blk = a_norm_1 if (k % 2 == 0) else a_norm_2
        a_big = a_big.at[k * N:(k + 1) * N, k * N:(k + 1) * N].set(blk)

    # Sentence masks are prefix masks (LMNet fills [:len]); carry lengths only.
    lens = jnp.stack([jnp.sum(mask_1, axis=-1), jnp.sum(mask_2, axis=-1)],
                     axis=1).reshape(2 * B).astype(jnp.int32)

    def kernel(lens_ref, x_ref, a_ref, w_ref, b_ref, o_ref):
        A = a_ref[...]                                      # (S, S)
        b_all = b_ref[...]                                  # (8, D)

        def bias(k):
            return b_all[k:k + 1, :]                        # (1, D)

        def gcn2(h, wa, ba, wb, bb):                        # two GCN layers
            h = jnp.maximum(
                jnp.dot(A, jnp.dot(h, wa, preferred_element_type=jnp.float32),
                        preferred_element_type=jnp.float32) + ba, 0.0)
            h = jnp.maximum(
                jnp.dot(A, jnp.dot(h, wb, preferred_element_type=jnp.float32),
                        preferred_element_type=jnp.float32) + bb, 0.0)
            return h

        # --- pre_interact_gnn (shared weights), whole (S, D) stack at once ---
        h = gcn2(x_ref[...], w_ref[0], bias(0), w_ref[1], bias(1))

        # --- BilinearMatrixAttention(use_input_biases=True), decomposed:
        #     attn = h1 Wcc h2^T + (h1 wbr) 1^T + 1 (wbq h2^T) + wbs
        wbc_k = w_ref[4]
        wbr_row = b_all[5:6, :]                             # (1, D)
        wbq_row = b_all[6:7, :]                             # (1, D)
        wbs_s = b_all[7:8, 0:1]                             # (1, 1)

        def masked_softmax_dim0(a, m):                      # torch dim=1 -> axis 0
            am = jnp.where(m > 0, a, -1e30)
            am = am - jnp.max(am, axis=0, keepdims=True)
            e = jnp.exp(am)
            inv = pl.reciprocal(jnp.sum(e, axis=0, keepdims=True) + 1e-13,
                                approx=True)
            return (e * inv) * m

        att_blocks = []
        for b in range(B):                                  # unrolled, B is tiny
            h1 = h[(2 * b) * N:(2 * b + 1) * N]             # (N, D)
            h2 = h[(2 * b + 1) * N:(2 * b + 2) * N]         # (N, D)

            t = jnp.dot(h1, wbc_k, preferred_element_type=jnp.float32) + wbq_row
            attn = lax.dot_general(t, h2, (((1,), (1,)), ((), ())),
                                   preferred_element_type=jnp.float32)   # (N, N)
            col = jnp.sum(h1 * wbr_row, axis=-1, keepdims=True) + wbs_s  # (N, 1)
            attn = attn + col

            idx = lax.broadcasted_iota(jnp.int32, (N, 1), 0)
            m1 = (idx < lens_ref[2 * b + 0]).astype(jnp.float32)
            m2 = (idx < lens_ref[2 * b + 1]).astype(jnp.float32)

            p1 = masked_softmax_dim0(attn, m1)
            p2 = masked_softmax_dim0(attn, m2)
            # attended_1 = p1^T @ h1 (no explicit transpose), attended_2 = p2 @ h2
            att1 = lax.dot_general(p1, h1, (((0,), (0,)), ((), ())),
                                   preferred_element_type=jnp.float32)   # (N, D)
            att2 = jnp.dot(p2, h2, preferred_element_type=jnp.float32)   # (N, D)
            att_blocks += [att2, att1]                      # pairs with [h1; h2]

        a_stack = jnp.concatenate(att_blocks, axis=0)       # (S, D)

        # --- attn_proj on [h; a; h-a; h*a] without the lane concat:
        #     z @ Wp = h @ (W0+W2) + a @ (W1-W2) + (h*a) @ W3
        new_h = jnp.maximum(
            jnp.dot(h, w_ref[5], preferred_element_type=jnp.float32)
            + jnp.dot(a_stack, w_ref[6], preferred_element_type=jnp.float32)
            + jnp.dot(h * a_stack, w_ref[7], preferred_element_type=jnp.float32)
            + bias(4), 0.0)

        # --- post_interact_gnn (shared weights), whole stack ---
        o = gcn2(new_h, w_ref[2], bias(2), w_ref[3], bias(3))            # (S, D)

        # --- lane-dense output slab (N, 2*B*D): [b0g1 | b0g2 | b1g1 | b1g2] ---
        o_ref[...] = jnp.concatenate(
            [o[k * N:(k + 1) * N] for k in range(2 * B)], axis=-1)

    out = pl.pallas_call(
        kernel,
        out_shape=jax.ShapeDtypeStruct((N, 2 * B * D), jnp.float32),
        grid_spec=pltpu.PrefetchScalarGridSpec(
            num_scalar_prefetch=1,
            grid=(1,),
            in_specs=[
                pl.BlockSpec((S, D), lambda i, lens: (0, 0)),
                pl.BlockSpec((S, S), lambda i, lens: (0, 0)),
                pl.BlockSpec((8, D, D), lambda i, lens: (0, 0, 0)),
                pl.BlockSpec((8, D), lambda i, lens: (0, 0)),
            ],
            out_specs=pl.BlockSpec((N, 2 * B * D), lambda i, lens: (0, 0)),
        ),
        compiler_params=pltpu.CompilerParams(
            dimension_semantics=("arbitrary",)),
    )(lens, x_all, a_big, w_slab, b_slab)

    # Unpack lane-dense slab: column block k is [b0g1, b0g2, b1g1, b1g2][k].
    o = out.reshape(N, 2 * B, D).transpose(1, 0, 2).reshape(B, 2, N, D)
    return o[:, 0], o[:, 1]


# -----------------------------------------------------------------------------
# Glue: dense normalized GCN adjacency (A_hat = D^-1/2 (A + I) D^-1/2)
# -----------------------------------------------------------------------------
def build_gcn_adj(edge_index, edge_weight, num_nodes):
    src, dst = edge_index[0], edge_index[1]
    loop = jnp.arange(num_nodes, dtype=src.dtype)
    src = jnp.concatenate([src, loop])
    dst = jnp.concatenate([dst, loop])
    w = jnp.concatenate([edge_weight, jnp.ones((num_nodes,), jnp.float32)])
    A = jnp.zeros((num_nodes, num_nodes), jnp.float32).at[dst, src].add(w)
    deg = A.sum(axis=1)
    dis = jnp.where(deg > 0, 1.0 / jnp.sqrt(deg), 0.0)
    return dis[:, None] * A * dis[None, :]


# -----------------------------------------------------------------------------
# Full forward of Net (sentence-pair task with use_gcn=True)
# -----------------------------------------------------------------------------
def net_forward(x_1, mask_1, x_2, mask_2, a_norm_1, a_norm_2,
                lm_pooler, params):
    pre, w_biaff, (w_proj, b_proj), post = params
    post_h_1, post_h_2 = fused_graph_forward(
        x_1, x_2, mask_1, mask_2, a_norm_1, a_norm_2,
        pre, w_biaff, w_proj, b_proj, post)
    return lm_pooler, mask_1, mask_2, x_1, x_2, post_h_1, post_h_2


if __name__ == "__main__":
    B, N, D = 2, 16, 32                       # batch, nodes/tokens, hidden
    key = jax.random.PRNGKey(0)
    ks = jax.random.split(key, 16)

    # Synthetic LM outputs (placeholder for LMNet).
    x_1 = jax.random.normal(ks[0], (B, N, D), jnp.float32)
    x_2 = jax.random.normal(ks[1], (B, N, D), jnp.float32)
    lm_pooler = jax.random.normal(ks[2], (B, D), jnp.float32)
    mask_1 = (jnp.arange(N)[None, :] < jnp.array([[12], [10]])).astype(jnp.float32)
    mask_2 = (jnp.arange(N)[None, :] < jnp.array([[9], [14]])).astype(jnp.float32)

    # Chain graph (bidirectional), shared across the batch (node_dim=1).
    s = jnp.arange(N - 1, dtype=jnp.int32)
    edge_index = jnp.stack([jnp.concatenate([s, s + 1]),
                            jnp.concatenate([s + 1, s])])
    ew_1 = jax.random.uniform(ks[3], (2 * (N - 1),), jnp.float32, 0.5, 1.5)
    ew_2 = jax.random.uniform(ks[4], (2 * (N - 1),), jnp.float32, 0.5, 1.5)
    a_norm_1 = build_gcn_adj(edge_index, ew_1, N)
    a_norm_2 = build_gcn_adj(edge_index, ew_2, N)

    def glorot(k, shape):
        fan_in, fan_out = shape[0], shape[1]
        lim = jnp.sqrt(6.0 / (fan_in + fan_out))
        return jax.random.uniform(k, shape, jnp.float32, -lim, lim)

    # pre_interact_gnn: 2 GCNConv (D -> D), post_interact_gnn: 2 GCNConv (D -> D)
    pre_params = ((glorot(ks[5], (D, D)), jnp.zeros((D,), jnp.float32)),
                  (glorot(ks[6], (D, D)), jnp.zeros((D,), jnp.float32)))
    post_params = ((glorot(ks[7], (D, D)), jnp.zeros((D,), jnp.float32)),
                   (glorot(ks[8], (D, D)), jnp.zeros((D,), jnp.float32)))
    # BilinearMatrixAttention with input biases: (D+1, D+1)
    w_biaff = glorot(ks[9], (D + 1, D + 1))
    # attn_proj: Linear(4*D -> D), stored as (4D, D) for x @ W
    w_proj = glorot(ks[10], (4 * D, D))
    b_proj = jnp.zeros((D,), jnp.float32)

    params = (pre_params, w_biaff, (w_proj, b_proj), post_params)

    outs = jax.jit(net_forward)(x_1, mask_1, x_2, mask_2,
                                a_norm_1, a_norm_2, lm_pooler, params)
    jax.block_until_ready(outs)

    # Basic sanity on shapes.
    assert outs[5].shape == (B, N, D) and outs[6].shape == (B, N, D)
    assert outs[3].shape == (B, N, D)
    print("KERNEL_OK")
</pallas_src>

<mosaic_0001>
module attributes {stable_mosaic.version = 11 : i64} {
  func.func @kernel(%arg0: i32, %arg1: memref<4xi32, #tpu.memory_space<smem>>, %arg2: memref<64x32xf32, #tpu.memory_space<vmem>>, %arg3: memref<64x64xf32, #tpu.memory_space<vmem>>, %arg4: memref<8x32x32xf32, #tpu.memory_space<vmem>>, %arg5: memref<8x32xf32, #tpu.memory_space<vmem>>, %arg6: memref<16x128xf32, #tpu.memory_space<vmem>>) attributes {dimension_semantics = [#tpu.dimension_semantics<arbitrary>], iteration_bounds = array<i64: 1>, scalar_prefetch = 1 : i64, scratch_operands = 0 : i64, tpu.core_type = #tpu.core_type<tc>, window_params = [{pipeline_mode = #tpu.pipeline_mode<synchronous>, transform_indices = @transform_0, window_bounds = array<i64: 64, 32>}, {pipeline_mode = #tpu.pipeline_mode<synchronous>, transform_indices = @transform_1, window_bounds = array<i64: 64, 64>}, {pipeline_mode = #tpu.pipeline_mode<synchronous>, transform_indices = @transform_2, window_bounds = array<i64: 8, 32, 32>}, {pipeline_mode = #tpu.pipeline_mode<synchronous>, transform_indices = @transform_3, window_bounds = array<i64: 8, 32>}, {pipeline_mode = #tpu.pipeline_mode<synchronous>, transform_indices = @transform_4, window_bounds = array<i64: 16, 128>}]} {
    %c0 = arith.constant 0 : index
    %c0_0 = arith.constant 0 : index
    %0 = vector.load %arg3[%c0, %c0_0] : memref<64x64xf32, #tpu.memory_space<vmem>>, vector<64x64xf32>
    %c0_1 = arith.constant 0 : index
    %c0_2 = arith.constant 0 : index
    %1 = vector.load %arg5[%c0_1, %c0_2] : memref<8x32xf32, #tpu.memory_space<vmem>>, vector<8x32xf32>
    %c0_3 = arith.constant 0 : index
    %c0_4 = arith.constant 0 : index
    %2 = vector.load %arg2[%c0_3, %c0_4] : memref<64x32xf32, #tpu.memory_space<vmem>>, vector<64x32xf32>
    %c0_5 = arith.constant 0 : index
    %c0_6 = arith.constant 0 : index
    %c0_7 = arith.constant 0 : index
    %3 = vector.load %arg4[%c0_5, %c0_6, %c0_7] : memref<8x32x32xf32, #tpu.memory_space<vmem>>, vector<1x32x32xf32>
    %4 = vector.shape_cast %3 : vector<1x32x32xf32> to vector<32x32xf32>
    %5 = vector.extract_strided_slice %1 {offsets = [0, 0], sizes = [1, 32], strides = [1, 1]} : vector<8x32xf32> to vector<1x32xf32>
    %c1 = arith.constant 1 : index
    %c0_8 = arith.constant 0 : index
    %c0_9 = arith.constant 0 : index
    %6 = vector.load %arg4[%c1, %c0_8, %c0_9] : memref<8x32x32xf32, #tpu.memory_space<vmem>>, vector<1x32x32xf32>
    %7 = vector.shape_cast %6 : vector<1x32x32xf32> to vector<32x32xf32>
    %8 = vector.extract_strided_slice %1 {offsets = [1, 0], sizes = [1, 32], strides = [1, 1]} : vector<8x32xf32> to vector<1x32xf32>
    %cst = arith.constant dense<0.000000e+00> : vector<64x32xf32>
    %9 = tpu.matmul %2, %4, %cst {dimension_numbers = #tpu.dot_dimension_numbers<[1], [0], [0], [1], [0, 0, 1, 1], [], []>} : vector<64x32xf32>, vector<32x32xf32>, vector<64x32xf32> -> vector<64x32xf32>
    %cst_10 = arith.constant dense<0.000000e+00> : vector<64x32xf32>
    %10 = tpu.matmul %0, %9, %cst_10 {dimension_numbers = #tpu.dot_dimension_numbers<[1], [0], [0], [1], [0, 0, 1, 1], [], []>} : vector<64x64xf32>, vector<64x32xf32>, vector<64x32xf32> -> vector<64x32xf32>
    %11 = vector.broadcast %5 : vector<1x32xf32> to vector<64x32xf32>
    %12 = arith.addf %10, %11 : vector<64x32xf32>
    %cst_11 = arith.constant 0.000000e+00 : f32
    %13 = vector.broadcast %cst_11 : f32 to vector<64x32xf32>
    %14 = arith.maximumf %12, %13 : vector<64x32xf32>
    %cst_12 = arith.constant dense<0.000000e+00> : vector<64x32xf32>
    %15 = tpu.matmul %14, %7, %cst_12 {dimension_numbers = #tpu.dot_dimension_numbers<[1], [0], [0], [1], [0, 0, 1, 1], [], []>} : vector<64x32xf32>, vector<32x32xf32>, vector<64x32xf32> -> vector<64x32xf32>
    %cst_13 = arith.constant dense<0.000000e+00> : vector<64x32xf32>
    %16 = tpu.matmul %0, %15, %cst_13 {dimension_numbers = #tpu.dot_dimension_numbers<[1], [0], [0], [1], [0, 0, 1, 1], [], []>} : vector<64x64xf32>, vector<64x32xf32>, vector<64x32xf32> -> vector<64x32xf32>
    %17 = vector.broadcast %8 : vector<1x32xf32> to vector<64x32xf32>
    %18 = arith.addf %16, %17 : vector<64x32xf32>
    %cst_14 = arith.constant 0.000000e+00 : f32
    %19 = vector.broadcast %cst_14 : f32 to vector<64x32xf32>
    %20 = arith.maximumf %18, %19 : vector<64x32xf32>
    %c4 = arith.constant 4 : index
    %c0_15 = arith.constant 0 : index
    %c0_16 = arith.constant 0 : index
    %21 = vector.load %arg4[%c4, %c0_15, %c0_16] : memref<8x32x32xf32, #tpu.memory_space<vmem>>, vector<1x32x32xf32>
    %22 = vector.shape_cast %21 : vector<1x32x32xf32> to vector<32x32xf32>
    %23 = vector.extract_strided_slice %1 {offsets = [5, 0], sizes = [1, 32], strides = [1, 1]} : vector<8x32xf32> to vector<1x32xf32>
    %24 = vector.extract_strided_slice %1 {offsets = [6, 0], sizes = [1, 32], strides = [1, 1]} : vector<8x32xf32> to vector<1x32xf32>
    %25 = vector.extract_strided_slice %1 {offsets = [7, 0], sizes = [1, 1], strides = [1, 1]} : vector<8x32xf32> to vector<1x1xf32>
    %26 = vector.extract_strided_slice %20 {offsets = [0, 0], sizes = [16, 32], strides = [1, 1]} : vector<64x32xf32> to vector<16x32xf32>
    %27 = vector.extract_strided_slice %20 {offsets = [16, 0], sizes = [16, 32], strides = [1, 1]} : vector<64x32xf32> to vector<16x32xf32>
    %cst_17 = arith.constant dense<0.000000e+00> : vector<16x32xf32>
    %28 = tpu.matmul %26, %22, %cst_17 {dimension_numbers = #tpu.dot_dimension_numbers<[1], [0], [0], [1], [0, 0, 1, 1], [], []>} : vector<16x32xf32>, vector<32x32xf32>, vector<16x32xf32> -> vector<16x32xf32>
    %29 = vector.broadcast %24 : vector<1x32xf32> to vector<16x32xf32>
    %30 = arith.addf %28, %29 : vector<16x32xf32>
    %cst_18 = arith.constant dense<0.000000e+00> : vector<16x16xf32>
    %31 = tpu.matmul %30, %27, %cst_18 {dimension_numbers = #tpu.dot_dimension_numbers<[1], [1], [0], [0], [0, 0, 1, 0], [], []>} : vector<16x32xf32>, vector<16x32xf32>, vector<16x16xf32> -> vector<16x16xf32>
    %32 = vector.broadcast %23 : vector<1x32xf32> to vector<16x32xf32>
    %33 = arith.mulf %26, %32 : vector<16x32xf32>
    %cst_19 = arith.constant dense<0.000000e+00> : vector<16xf32>
    %34 = vector.multi_reduction <add>, %33, %cst_19 [1] : vector<16x32xf32> to vector<16xf32>
    %35 = vector.shape_cast %34 : vector<16xf32> to vector<16x1xf32>
    %36 = vector.broadcast %25 : vector<1x1xf32> to vector<16x1xf32>
    %37 = arith.addf %35, %36 : vector<16x1xf32>
    %38 = vector.broadcast %37 : vector<16x1xf32> to vector<16x16xf32>
    %39 = arith.addf %31, %38 : vector<16x16xf32>
    %40 = tpu.iota {dimensions = array<i32: 0>} : vector<16x1xi32>
    %c0_20 = arith.constant 0 : index
    %41 = memref.load %arg1[%c0_20] : memref<4xi32, #tpu.memory_space<smem>>
    %42 = vector.broadcast %41 : i32 to vector<16x1xi32>
    %43 = arith.cmpi slt, %40, %42 : vector<16x1xi32>
    %44 = arith.extui %43 : vector<16x1xi1> to vector<16x1xi32>
    %45 = arith.sitofp %44 : vector<16x1xi32> to vector<16x1xf32>
    %c1_21 = arith.constant 1 : index
    %46 = memref.load %arg1[%c1_21] : memref<4xi32, #tpu.memory_space<smem>>
    %47 = vector.broadcast %46 : i32 to vector<16x1xi32>
    %48 = arith.cmpi slt, %40, %47 : vector<16x1xi32>
    %49 = arith.extui %48 : vector<16x1xi1> to vector<16x1xi32>
    %50 = arith.sitofp %49 : vector<16x1xi32> to vector<16x1xf32>
    %cst_22 = arith.constant 0.000000e+00 : f32
    %51 = vector.broadcast %cst_22 : f32 to vector<16x1xf32>
    %52 = arith.cmpf ogt, %45, %51 : vector<16x1xf32>
    %cst_23 = arith.constant -1.000000e+30 : f32
    %53 = vector.shape_cast %52 : vector<16x1xi1> to vector<16x1xi1>
    %54 = vector.broadcast %53 : vector<16x1xi1> to vector<16x16xi1>
    %55 = vector.broadcast %cst_23 : f32 to vector<16x16xf32>
    %56 = arith.select %54, %39, %55 : vector<16x16xi1>, vector<16x16xf32>
    %cst_24 = arith.constant dense<0xFF800000> : vector<16xf32>
    %57 = vector.multi_reduction <maximumf>, %56, %cst_24 [0] : vector<16x16xf32> to vector<16xf32>
    %58 = vector.shape_cast %57 : vector<16xf32> to vector<1x16xf32>
    %59 = vector.broadcast %58 : vector<1x16xf32> to vector<16x16xf32>
    %60 = arith.subf %56, %59 : vector<16x16xf32>
    %61 = math.exp %60 : vector<16x16xf32>
    %cst_25 = arith.constant dense<0.000000e+00> : vector<16xf32>
    %62 = vector.multi_reduction <add>, %61, %cst_25 [0] : vector<16x16xf32> to vector<16xf32>
    %63 = vector.shape_cast %62 : vector<16xf32> to vector<1x16xf32>
    %cst_26 = arith.constant 9.99999982E-14 : f32
    %64 = vector.broadcast %cst_26 : f32 to vector<1x16xf32>
    %65 = arith.addf %63, %64 : vector<1x16xf32>
    %66 = tpu.reciprocal %65 {approx = true} : vector<1x16xf32> -> vector<1x16xf32>
    %67 = vector.broadcast %66 : vector<1x16xf32> to vector<16x16xf32>
    %68 = arith.mulf %61, %67 : vector<16x16xf32>
    %69 = vector.broadcast %45 : vector<16x1xf32> to vector<16x16xf32>
    %70 = arith.mulf %68, %69 : vector<16x16xf32>
    %cst_27 = arith.constant 0.000000e+00 : f32
    %71 = vector.broadcast %cst_27 : f32 to vector<16x1xf32>
    %72 = arith.cmpf ogt, %50, %71 : vector<16x1xf32>
    %cst_28 = arith.constant -1.000000e+30 : f32
    %73 = vector.shape_cast %72 : vector<16x1xi1> to vector<16x1xi1>
    %74 = vector.broadcast %73 : vector<16x1xi1> to vector<16x16xi1>
    %75 = vector.broadcast %cst_28 : f32 to vector<16x16xf32>
    %76 = arith.select %74, %39, %75 : vector<16x16xi1>, vector<16x16xf32>
    %cst_29 = arith.constant dense<0xFF800000> : vector<16xf32>
    %77 = vector.multi_reduction <maximumf>, %76, %cst_29 [0] : vector<16x16xf32> to vector<16xf32>
    %78 = vector.shape_cast %77 : vector<16xf32> to vector<1x16xf32>
    %79 = vector.broadcast %78 : vector<1x16xf32> to vector<16x16xf32>
    %80 = arith.subf %76, %79 : vector<16x16xf32>
    %81 = math.exp %80 : vector<16x16xf32>
    %cst_30 = arith.constant dense<0.000000e+00> : vector<16xf32>
    %82 = vector.multi_reduction <add>, %81, %cst_30 [0] : vector<16x16xf32> to vector<16xf32>
    %83 = vector.shape_cast %82 : vector<16xf32> to vector<1x16xf32>
    %cst_31 = arith.constant 9.99999982E-14 : f32
    %84 = vector.broadcast %cst_31 : f32 to vector<1x16xf32>
    %85 = arith.addf %83, %84 : vector<1x16xf32>
    %86 = tpu.reciprocal %85 {approx = true} : vector<1x16xf32> -> vector<1x16xf32>
    %87 = vector.broadcast %86 : vector<1x16xf32> to vector<16x16xf32>
    %88 = arith.mulf %81, %87 : vector<16x16xf32>
    %89 = vector.broadcast %50 : vector<16x1xf32> to vector<16x16xf32>
    %90 = arith.mulf %88, %89 : vector<16x16xf32>
    %cst_32 = arith.constant dense<0.000000e+00> : vector<16x32xf32>
    %91 = tpu.matmul %70, %26, %cst_32 {dimension_numbers = #tpu.dot_dimension_numbers<[0], [0], [1], [1], [0, 1, 1, 1], [], []>} : vector<16x16xf32>, vector<16x32xf32>, vector<16x32xf32> -> vector<16x32xf32>
    %cst_33 = arith.constant dense<0.000000e+00> : vector<16x32xf32>
    %92 = tpu.matmul %90, %27, %cst_33 {dimension_numbers = #tpu.dot_dimension_numbers<[1], [0], [0], [1], [0, 0, 1, 1], [], []>} : vector<16x16xf32>, vector<16x32xf32>, vector<16x32xf32> -> vector<16x32xf32>
    %93 = vector.extract_strided_slice %20 {offsets = [32, 0], sizes = [16, 32], strides = [1, 1]} : vector<64x32xf32> to vector<16x32xf32>
    %94 = vector.extract_strided_slice %20 {offsets = [48, 0], sizes = [16, 32], strides = [1, 1]} : vector<64x32xf32> to vector<16x32xf32>
    %cst_34 = arith.constant dense<0.000000e+00> : vector<16x32xf32>
    %95 = tpu.matmul %93, %22, %cst_34 {dimension_numbers = #tpu.dot_dimension_numbers<[1], [0], [0], [1], [0, 0, 1, 1], [], []>} : vector<16x32xf32>, vector<32x32xf32>, vector<16x32xf32> -> vector<16x32xf32>
    %96 = vector.broadcast %24 : vector<1x32xf32> to vector<16x32xf32>
    %97 = arith.addf %95, %96 : vector<16x32xf32>
    %cst_35 = arith.constant dense<0.000000e+00> : vector<16x16xf32>
    %98 = tpu.matmul %97, %94, %cst_35 {dimension_numbers = #tpu.dot_dimension_numbers<[1], [1], [0], [0], [0, 0, 1, 0], [], []>} : vector<16x32xf32>, vector<16x32xf32>, vector<16x16xf32> -> vector<16x16xf32>
    %99 = vector.broadcast %23 : vector<1x32xf32> to vector<16x32xf32>
    %100 = arith.mulf %93, %99 : vector<16x32xf32>
    %cst_36 = arith.constant dense<0.000000e+00> : vector<16xf32>
    %101 = vector.multi_reduction <add>, %100, %cst_36 [1] : vector<16x32xf32> to vector<16xf32>
    %102 = vector.shape_cast %101 : vector<16xf32> to vector<16x1xf32>
    %103 = vector.broadcast %25 : vector<1x1xf32> to vector<16x1xf32>
    %104 = arith.addf %102, %103 : vector<16x1xf32>
    %105 = vector.broadcast %104 : vector<16x1xf32> to vector<16x16xf32>
    %106 = arith.addf %98, %105 : vector<16x16xf32>
    %107 = tpu.iota {dimensions = array<i32: 0>} : vector<16x1xi32>
    %c2 = arith.constant 2 : index
    %108 = memref.load %arg1[%c2] : memref<4xi32, #tpu.memory_space<smem>>
    %109 = vector.broadcast %108 : i32 to vector<16x1xi32>
    %110 = arith.cmpi slt, %107, %109 : vector<16x1xi32>
    %111 = arith.extui %110 : vector<16x1xi1> to vector<16x1xi32>
    %112 = arith.sitofp %111 : vector<16x1xi32> to vector<16x1xf32>
    %c3 = arith.constant 3 : index
    %113 = memref.load %arg1[%c3] : memref<4xi32, #tpu.memory_space<smem>>
    %114 = vector.broadcast %113 : i32 to vector<16x1xi32>
    %115 = arith.cmpi slt, %107, %114 : vector<16x1xi32>
    %116 = arith.extui %115 : vector<16x1xi1> to vector<16x1xi32>
    %117 = arith.sitofp %116 : vector<16x1xi32> to vector<16x1xf32>
    %cst_37 = arith.constant 0.000000e+00 : f32
    %118 = vector.broadcast %cst_37 : f32 to vector<16x1xf32>
    %119 = arith.cmpf ogt, %112, %118 : vector<16x1xf32>
    %cst_38 = arith.constant -1.000000e+30 : f32
    %120 = vector.shape_cast %119 : vector<16x1xi1> to vector<16x1xi1>
    %121 = vector.broadcast %120 : vector<16x1xi1> to vector<16x16xi1>
    %122 = vector.broadcast %cst_38 : f32 to vector<16x16xf32>
    %123 = arith.select %121, %106, %122 : vector<16x16xi1>, vector<16x16xf32>
    %cst_39 = arith.constant dense<0xFF800000> : vector<16xf32>
    %124 = vector.multi_reduction <maximumf>, %123, %cst_39 [0] : vector<16x16xf32> to vector<16xf32>
    %125 = vector.shape_cast %124 : vector<16xf32> to vector<1x16xf32>
    %126 = vector.broadcast %125 : vector<1x16xf32> to vector<16x16xf32>
    %127 = arith.subf %123, %126 : vector<16x16xf32>
    %128 = math.exp %127 : vector<16x16xf32>
    %cst_40 = arith.constant dense<0.000000e+00> : vector<16xf32>
    %129 = vector.multi_reduction <add>, %128, %cst_40 [0] : vector<16x16xf32> to vector<16xf32>
    %130 = vector.shape_cast %129 : vector<16xf32> to vector<1x16xf32>
    %cst_41 = arith.constant 9.99999982E-14 : f32
    %131 = vector.broadcast %cst_41 : f32 to vector<1x16xf32>
    %132 = arith.addf %130, %131 : vector<1x16xf32>
    %133 = tpu.reciprocal %132 {approx = true} : vector<1x16xf32> -> vector<1x16xf32>
    %134 = vector.broadcast %133 : vector<1x16xf32> to vector<16x16xf32>
    %135 = arith.mulf %128, %134 : vector<16x16xf32>
    %136 = vector.broadcast %112 : vector<16x1xf32> to vector<16x16xf32>
    %137 = arith.mulf %135, %136 : vector<16x16xf32>
    %cst_42 = arith.constant 0.000000e+00 : f32
    %138 = vector.broadcast %cst_42 : f32 to vector<16x1xf32>
    %139 = arith.cmpf ogt, %117, %138 : vector<16x1xf32>
    %cst_43 = arith.constant -1.000000e+30 : f32
    %140 = vector.shape_cast %139 : vector<16x1xi1> to vector<16x1xi1>
    %141 = vector.broadcast %140 : vector<16x1xi1> to vector<16x16xi1>
    %142 = vector.broadcast %cst_43 : f32 to vector<16x16xf32>
    %143 = arith.select %141, %106, %142 : vector<16x16xi1>, vector<16x16xf32>
    %cst_44 = arith.constant dense<0xFF800000> : vector<16xf32>
    %144 = vector.multi_reduction <maximumf>, %143, %cst_44 [0] : vector<16x16xf32> to vector<16xf32>
    %145 = vector.shape_cast %144 : vector<16xf32> to vector<1x16xf32>
    %146 = vector.broadcast %145 : vector<1x16xf32> to vector<16x16xf32>
    %147 = arith.subf %143, %146 : vector<16x16xf32>
    %148 = math.exp %147 : vector<16x16xf32>
    %cst_45 = arith.constant dense<0.000000e+00> : vector<16xf32>
    %149 = vector.multi_reduction <add>, %148, %cst_45 [0] : vector<16x16xf32> to vector<16xf32>
    %150 = vector.shape_cast %149 : vector<16xf32> to vector<1x16xf32>
    %cst_46 = arith.constant 9.99999982E-14 : f32
    %151 = vector.broadcast %cst_46 : f32 to vector<1x16xf32>
    %152 = arith.addf %150, %151 : vector<1x16xf32>
    %153 = tpu.reciprocal %152 {approx = true} : vector<1x16xf32> -> vector<1x16xf32>
    %154 = vector.broadcast %153 : vector<1x16xf32> to vector<16x16xf32>
    %155 = arith.mulf %148, %154 : vector<16x16xf32>
    %156 = vector.broadcast %117 : vector<16x1xf32> to vector<16x16xf32>
    %157 = arith.mulf %155, %156 : vector<16x16xf32>
    %cst_47 = arith.constant dense<0.000000e+00> : vector<16x32xf32>
    %158 = tpu.matmul %137, %93, %cst_47 {dimension_numbers = #tpu.dot_dimension_numbers<[0], [0], [1], [1], [0, 1, 1, 1], [], []>} : vector<16x16xf32>, vector<16x32xf32>, vector<16x32xf32> -> vector<16x32xf32>
    %cst_48 = arith.constant dense<0.000000e+00> : vector<16x32xf32>
    %159 = tpu.matmul %157, %94, %cst_48 {dimension_numbers = #tpu.dot_dimension_numbers<[1], [0], [0], [1], [0, 0, 1, 1], [], []>} : vector<16x16xf32>, vector<16x32xf32>, vector<16x32xf32> -> vector<16x32xf32>
    %160 = tpu.concatenate %92, %91, %159, %158 in 0 : vector<16x32xf32>, vector<16x32xf32>, vector<16x32xf32>, vector<16x32xf32> -> vector<64x32xf32>
    %c5 = arith.constant 5 : index
    %c0_49 = arith.constant 0 : index
    %c0_50 = arith.constant 0 : index
    %161 = vector.load %arg4[%c5, %c0_49, %c0_50] : memref<8x32x32xf32, #tpu.memory_space<vmem>>, vector<1x32x32xf32>
    %162 = vector.shape_cast %161 : vector<1x32x32xf32> to vector<32x32xf32>
    %cst_51 = arith.constant dense<0.000000e+00> : vector<64x32xf32>
    %163 = tpu.matmul %20, %162, %cst_51 {dimension_numbers = #tpu.dot_dimension_numbers<[1], [0], [0], [1], [0, 0, 1, 1], [], []>} : vector<64x32xf32>, vector<32x32xf32>, vector<64x32xf32> -> vector<64x32xf32>
    %c6 = arith.constant 6 : index
    %c0_52 = arith.constant 0 : index
    %c0_53 = arith.constant 0 : index
    %164 = vector.load %arg4[%c6, %c0_52, %c0_53] : memref<8x32x32xf32, #tpu.memory_space<vmem>>, vector<1x32x32xf32>
    %165 = vector.shape_cast %164 : vector<1x32x32xf32> to vector<32x32xf32>
    %cst_54 = arith.constant dense<0.000000e+00> : vector<64x32xf32>
    %166 = tpu.matmul %160, %165, %cst_54 {dimension_numbers = #tpu.dot_dimension_numbers<[1], [0], [0], [1], [0, 0, 1, 1], [], []>} : vector<64x32xf32>, vector<32x32xf32>, vector<64x32xf32> -> vector<64x32xf32>
    %167 = arith.addf %163, %166 : vector<64x32xf32>
    %168 = arith.mulf %20, %160 : vector<64x32xf32>
    %c7 = arith.constant 7 : index
    %c0_55 = arith.constant 0 : index
    %c0_56 = arith.constant 0 : index
    %169 = vector.load %arg4[%c7, %c0_55, %c0_56] : memref<8x32x32xf32, #tpu.memory_space<vmem>>, vector<1x32x32xf32>
    %170 = vector.shape_cast %169 : vector<1x32x32xf32> to vector<32x32xf32>
    %cst_57 = arith.constant dense<0.000000e+00> : vector<64x32xf32>
    %171 = tpu.matmul %168, %170, %cst_57 {dimension_numbers = #tpu.dot_dimension_numbers<[1], [0], [0], [1], [0, 0, 1, 1], [], []>} : vector<64x32xf32>, vector<32x32xf32>, vector<64x32xf32> -> vector<64x32xf32>
    %172 = arith.addf %167, %171 : vector<64x32xf32>
    %173 = vector.extract_strided_slice %1 {offsets = [4, 0], sizes = [1, 32], strides = [1, 1]} : vector<8x32xf32> to vector<1x32xf32>
    %174 = vector.broadcast %173 : vector<1x32xf32> to vector<64x32xf32>
    %175 = arith.addf %172, %174 : vector<64x32xf32>
    %cst_58 = arith.constant 0.000000e+00 : f32
    %176 = vector.broadcast %cst_58 : f32 to vector<64x32xf32>
    %177 = arith.maximumf %175, %176 : vector<64x32xf32>
    %c2_59 = arith.constant 2 : index
    %c0_60 = arith.constant 0 : index
    %c0_61 = arith.constant 0 : index
    %178 = vector.load %arg4[%c2_59, %c0_60, %c0_61] : memref<8x32x32xf32, #tpu.memory_space<vmem>>, vector<1x32x32xf32>
    %179 = vector.shape_cast %178 : vector<1x32x32xf32> to vector<32x32xf32>
    %180 = vector.extract_strided_slice %1 {offsets = [2, 0], sizes = [1, 32], strides = [1, 1]} : vector<8x32xf32> to vector<1x32xf32>
    %c3_62 = arith.constant 3 : index
    %c0_63 = arith.constant 0 : index
    %c0_64 = arith.constant 0 : index
    %181 = vector.load %arg4[%c3_62, %c0_63, %c0_64] : memref<8x32x32xf32, #tpu.memory_space<vmem>>, vector<1x32x32xf32>
    %182 = vector.shape_cast %181 : vector<1x32x32xf32> to vector<32x32xf32>
    %183 = vector.extract_strided_slice %1 {offsets = [3, 0], sizes = [1, 32], strides = [1, 1]} : vector<8x32xf32> to vector<1x32xf32>
    %cst_65 = arith.constant dense<0.000000e+00> : vector<64x32xf32>
    %184 = tpu.matmul %177, %179, %cst_65 {dimension_numbers = #tpu.dot_dimension_numbers<[1], [0], [0], [1], [0, 0, 1, 1], [], []>} : vector<64x32xf32>, vector<32x32xf32>, vector<64x32xf32> -> vector<64x32xf32>
    %cst_66 = arith.constant dense<0.000000e+00> : vector<64x32xf32>
    %185 = tpu.matmul %0, %184, %cst_66 {dimension_numbers = #tpu.dot_dimension_numbers<[1], [0], [0], [1], [0, 0, 1, 1], [], []>} : vector<64x64xf32>, vector<64x32xf32>, vector<64x32xf32> -> vector<64x32xf32>
    %186 = vector.broadcast %180 : vector<1x32xf32> to vector<64x32xf32>
    %187 = arith.addf %185, %186 : vector<64x32xf32>
    %cst_67 = arith.constant 0.000000e+00 : f32
    %188 = vector.broadcast %cst_67 : f32 to vector<64x32xf32>
    %189 = arith.maximumf %187, %188 : vector<64x32xf32>
    %cst_68 = arith.constant dense<0.000000e+00> : vector<64x32xf32>
    %190 = tpu.matmul %189, %182, %cst_68 {dimension_numbers = #tpu.dot_dimension_numbers<[1], [0], [0], [1], [0, 0, 1, 1], [], []>} : vector<64x32xf32>, vector<32x32xf32>, vector<64x32xf32> -> vector<64x32xf32>
    %cst_69 = arith.constant dense<0.000000e+00> : vector<64x32xf32>
    %191 = tpu.matmul %0, %190, %cst_69 {dimension_numbers = #tpu.dot_dimension_numbers<[1], [0], [0], [1], [0, 0, 1, 1], [], []>} : vector<64x64xf32>, vector<64x32xf32>, vector<64x32xf32> -> vector<64x32xf32>
    %192 = vector.broadcast %183 : vector<1x32xf32> to vector<64x32xf32>
    %193 = arith.addf %191, %192 : vector<64x32xf32>
    %cst_70 = arith.constant 0.000000e+00 : f32
    %194 = vector.broadcast %cst_70 : f32 to vector<64x32xf32>
    %195 = arith.maximumf %193, %194 : vector<64x32xf32>
    %196 = vector.extract_strided_slice %195 {offsets = [0, 0], sizes = [16, 32], strides = [1, 1]} : vector<64x32xf32> to vector<16x32xf32>
    %197 = vector.extract_strided_slice %195 {offsets = [16, 0], sizes = [16, 32], strides = [1, 1]} : vector<64x32xf32> to vector<16x32xf32>
    %198 = vector.extract_strided_slice %195 {offsets = [32, 0], sizes = [16, 32], strides = [1, 1]} : vector<64x32xf32> to vector<16x32xf32>
    %199 = vector.extract_strided_slice %195 {offsets = [48, 0], sizes = [16, 32], strides = [1, 1]} : vector<64x32xf32> to vector<16x32xf32>
    %200 = tpu.concatenate %196, %197, %198, %199 in 1 : vector<16x32xf32>, vector<16x32xf32>, vector<16x32xf32>, vector<16x32xf32> -> vector<16x128xf32>
    %c0_71 = arith.constant 0 : index
    %c0_72 = arith.constant 0 : index
    %201 = vector.load %arg6[%c0_71, %c0_72] : memref<16x128xf32, #tpu.memory_space<vmem>>, vector<16x128xf32>
    tpu.vector_store %arg6[%c0_71, %c0_72], %200 {strides = array<i32>} : memref<16x128xf32, #tpu.memory_space<vmem>>, vector<16x128xf32>,
    return
  }
  func.func @transform_0(%arg0: i32, %arg1: memref<4xi32, #tpu.memory_space<smem>>) -> (i32, i32) {
    %c0_i32 = arith.constant 0 : i32
    %c0_i32_0 = arith.constant 0 : i32
    %c0_i32_1 = arith.constant 0 : i32
    return %c0_i32, %c0_i32_0 : i32, i32
  }
  func.func @transform_1(%arg0: i32, %arg1: memref<4xi32, #tpu.memory_space<smem>>) -> (i32, i32) {
    %c0_i32 = arith.constant 0 : i32
    %c0_i32_0 = arith.constant 0 : i32
    %c0_i32_1 = arith.constant 0 : i32
    return %c0_i32, %c0_i32_0 : i32, i32
  }
  func.func @transform_2(%arg0: i32, %arg1: memref<4xi32, #tpu.memory_space<smem>>) -> (i32, i32, i32) {
    %c0_i32 = arith.constant 0 : i32
    %c0_i32_0 = arith.constant 0 : i32
    %c0_i32_1 = arith.constant 0 : i32
    %c0_i32_2 = arith.constant 0 : i32
    return %c0_i32, %c0_i32_0, %c0_i32_1 : i32, i32, i32
  }
  func.func @transform_3(%arg0: i32, %arg1: memref<4xi32, #tpu.memory_space<smem>>) -> (i32, i32) {
    %c0_i32 = arith.constant 0 : i32
    %c0_i32_0 = arith.constant 0 : i32
    %c0_i32_1 = arith.constant 0 : i32
    return %c0_i32, %c0_i32_0 : i32, i32
  }
  func.func @transform_4(%arg0: i32, %arg1: memref<4xi32, #tpu.memory_space<smem>>) -> (i32, i32) {
    %c0_i32 = arith.constant 0 : i32
    %c0_i32_0 = arith.constant 0 : i32
    %c0_i32_1 = arith.constant 0 : i32
    return %c0_i32, %c0_i32_0 : i32, i32
  }
}

</mosaic_0001>

<bundles_post_ra>
// kernel: net_forward.1
= control target key start
LH: loop header
LB: loop body
LE: loop exit
PB: predicated region body
PF: predicated region fallthrough
CT: control target
= control target key end

     0   :  { %s3957_s0 = inlined_call_operand.vmem [shape: s32[4], index: 0, kind: input, shape index: {}]   ;;  %s3958_s1 = inlined_call_operand.vmem [shape: f32[64,32], index: 1, kind: input, shape index: {}]   ;;  %s3959_s2 = inlined_call_operand.vmem [shape: f32[64,64], index: 2, kind: input, shape index: {}]   ;;  %s3960_s3 = inlined_call_operand.vmem [shape: f32[8,32,32], index: 3, kind: input, shape index: {}]   ;;  %s3961_s4 = inlined_call_operand.vmem [shape: f32[8,32], index: 4, kind: input, shape index: {}]   ;;  %s3962_s5 = inlined_call_operand.vmem [shape: f32[16,128], index: 5, kind: output, shape index: {}]  }
   0x1   :  { %s10_s20 = sshll.u32 %s3957_s0, 4  ;;  %s11_s20 = int_to_ptr.vmem [resolvable:$true] %s10_s20 }
   0x2   :  { %s3358_s21 = scalar_lea.vmem %s11_s20, 16  ;;  %p3363_p1 = scmp.lt.s32.totalorder %s11_s20, %s11_s20 }
   0x3   :  { %p3359_p0 = scmp.ne.s32.totalorder %s11_s20, %s3358_s21  ;;  %p3364_p2 = scmp.lt.s32.totalorder %s3358_s21, %s3358_s21 }
   0x5   :  { %p3365_p3 = por %p3364_p2, %p3363_p1 }
   0x7   :  { %p3366_p4 = pnand %p3365_p3, %p3359_p0 }
   0x9   :  { %3369 = shalt.err (!%p3366_p4)  }
   0xa   :  { %s3372_s22 = smov [#allocation3]  }
   0xb   :  { %13 = dma.vmem_to_smem %s11_s20, 16, %s3372_s22, [#allocation2] }
   0xc   :  { %3370 = dma.done.wait [#allocation2], 16 }
   0xd   :  { %3371 = vsyncadd [#allocation2], 4294967280 }
   0xe   :  { %15 = sfence }
   0xf   :  { %v41_v0 = vld [vmem:[%s3960_s3] sm:$0xff]  ;;  %v42_v1 = vld [vmem:[%s3960_s3 + $0x8] sm:$0xff]  ;;  %v43_v2 = vld [vmem:[%s3960_s3 + $0x10] sm:$0xff]  ;;  %vm50_vm0 = vcmask 261120   ;;  %vm184_vm1 = vcmask 523264   ;;  %v180_v40 = vlaneseq  ;;  %s776_s0 = sld [smem:[#allocation3]] }
  0x10   :  { %v3137_v3 = vpack.c.bf16 %v42_v1, %v41_v0  ;;  %v44_v4 = vld [vmem:[%s3960_s3 + $0x18] sm:$0xff]  ;;  %v33_v5 = vld [vmem:[%s3958_s1] sm:$0xff]  ;;  %v34_v7 = vld [vmem:[%s3958_s1 + $0x8] sm:$0xff]  ;;  %s2538_s27 = sld [smem:[#allocation3 + $0x1]]  ;;  %vm800_vm9 = vcmask 130048   ;;  %s2551_s28 = sld [smem:[#allocation3 + $0x2]] }
  0x11   :  { %v3141_v6 = vpack.c.bf16 %v44_v4, %v43_v2  ;;  %2829 = vmatprep.mubr.msk.f32.mxu0 %vm50_vm0, %v33_v5  ;;  %v35_v8 = vld [vmem:[%s3958_s1 + $0x10] sm:$0xff]  ;;  %v36_v9 = vld [vmem:[%s3958_s1 + $0x18] sm:$0xff]  ;;  %v37_v10 = vld [vmem:[%s3958_s1 + $0x20] sm:$0xff]  ;;  %v3525_v41 = vshrl.u32 %v180_v40, 7  ;;  %s2554_s29 = sld [smem:[#allocation3 + $0x3]]  ;;  %s3377_s8 = smov 96  }
  0x12   :  { %3138 = vmatprep.subr.bf16.mxu0 %v3137_v3  ;;  %v38_v11 = vld [vmem:[%s3958_s1 + $0x28] sm:$0xff]  ;;  %v39_v12 = vld [vmem:[%s3958_s1 + $0x30] sm:$0xff]  ;;  %v40_v13 = vld [vmem:[%s3958_s1 + $0x38] sm:$0xff] }
  0x13   :  { %3140 = vmatpush3.bf16.msra.mxu0 %v3137_v3  ;;  %v3458_v14 = vld [vmem:[%s3959_s2] sm:$0xff]  ;;  %v2491_v16 = vld [vmem:[%s3960_s3 + $0x28] sm:$0xff]  ;;  %v2492_v17 = vld [vmem:[%s3960_s3 + $0x30] sm:$0xff]  ;;  %v182_v42 = vsub.s32 0, %v3525_v41 }
  0x14   :  { %3142 = vmatprep.subr.bf16.mxu0 %v3141_v6  ;;  %2857 = vmatprep.mubr.msk.f32.mxu1 %vm184_vm1, %v3458_v14  ;;  %v2490_v15 = vld [vmem:[%s3960_s3 + $0x20] sm:$0xff]  ;;  %v2493_v19 = vld [vmem:[%s3960_s3 + $0x38] sm:$0xff]  ;;  %v3477_v33 = vld [vmem:[%s3959_s2 + $0x8] sm:$0xff] }
  0x15   :  { %v3161_v18 = vpack.c.bf16 %v2491_v16, %v2490_v15  ;;  %v3165_v20 = vpack.c.bf16 %v2493_v19, %v2492_v17  ;;  %v3482_v34 = vld [vmem:[%s3959_s2 + $0x10] sm:$0xff]  ;;  %v3491_v35 = vld [vmem:[%s3959_s2 + $0x18] sm:$0xff]  ;;  %v3496_v36 = vld [vmem:[%s3959_s2 + $0x20] sm:$0xff] }
  0x16   :  { %v3505_v37 = vld [vmem:[%s3959_s2 + $0x28] sm:$0xff]  ;;  %v3510_v38 = vld [vmem:[%s3959_s2 + $0x30] sm:$0xff]  ;;  %v3519_v39 = vld [vmem:[%s3959_s2 + $0x38] sm:$0xff] }
  0x17   :  { %3144 = vmatpush3.bf16.msra.mxu0 %v3141_v6  ;;  %v3531_v43 = vld [vmem:[%s3961_s4] sm:$0xff]  ;;  %v2527_v6 = vld [vmem:[%s3960_s3 + $0x88] sm:$0xff]  ;;  %vm3595_vm2 = vmpackc.low %vm50_vm0, %vm50_vm0 }
  0x18   :  { %3162 = vmatprep.subr.bf16.mxu0 %v3161_v18  ;;  %v183_v44 = vrot.slane %v3531_v43, %v182_v42  ;;  %v2526_v5 = vld [vmem:[%s3960_s3 + $0x80] sm:$0xff] }
  0x1a   :  { %2830 = vmatmul.mubr.msk.f32.vlgmr.msra.gmra.mrb[0].mxu0 %vm50_vm0, %v34_v7  ;;  %v2528_v7 = vld [vmem:[%s3960_s3 + $0x90] sm:$0xff] }
  0x1b   :  { %2832 = vmatprep.mubr.msk.f32.mxu0 %vm50_vm0, %v35_v8  ;;  %3164 = vmatpush3.bf16.msra.mxu0 %v3161_v18  ;;  %v3185_v8 = vpack.c.bf16 %v2527_v6, %v2526_v5 }
  0x1c   :  { %3166 = vmatprep.subr.bf16.mxu0 %v3165_v20 }
  0x1e   :  { %2833 = vmatmul.mubr.msk.f32.gmra.mrb[2].mxu0 %vm50_vm0, %v36_v9  ;;  %v2529_v9 = vld [vmem:[%s3960_s3 + $0x98] sm:$0xff] }
  0x1f   :  { %2835 = vmatprep.mubr.msk.f32.mxu0 %vm50_vm0, %v37_v10  ;;  %3168 = vmatpush3.bf16.msra.mxu0 %v3165_v20  ;;  %v3189_v10 = vpack.c.bf16 %v2529_v9, %v2528_v7 }
  0x20   :  { %3186 = vmatprep.subr.bf16.mxu0 %v3185_v8 }
  0x22   :  { %2836 = vmatmul.mubr.msk.f32.gmra.mrb[4].mxu0 %vm50_vm0, %v38_v11 }
  0x23   :  { %2838 = vmatprep.mubr.msk.f32.mxu0 %vm50_vm0, %v39_v12 }
  0x26   :  { %2839 = vmatmul.mubr.msk.f32.gmra.mrb[6].mxu0 %vm50_vm0, %v40_v13 }
  0xed   :  { %v2831_v21 = vpop.f32.mrb[0].mxu0 }
  0xee   :  { %v141_v22 = vpop.f32.mrb[1].mxu0 }
  0xef   :  { %v3145_v23 = vpack.c.bf16 %v2831_v21, %v141_v22 }
  0xf1   :  { %v2834_v24 = vpop.f32.mrb[2].mxu0  ;;  %3146 = vmatprep.subr.bf16.mxu1 %v3145_v23 }
  0xf2   :  { %v151_v25 = vpop.f32.mrb[3].mxu0  ;;  %3148 = vmatpush3.bf16.msra.mxu1 %v3145_v23 }
  0xf3   :  { %v3149_v26 = vpack.c.bf16 %v2834_v24, %v151_v25  ;;  %v453_v24 = vsub.s32 1, %v3525_v41 }
  0xf5   :  { %v2837_v27 = vpop.f32.mrb[4].mxu0  ;;  %3150 = vmatprep.subr.bf16.mxu1 %v3149_v26  ;;  %v3570_v25 = vrot.slane %v3531_v43, %v453_v24 }
  0xf6   :  { %v161_v28 = vpop.f32.mrb[5].mxu0  ;;  %3152 = vmatpush3.bf16.msra.mxu1 %v3149_v26  ;;  %v660_v26 = vsub.s32 5, %v3525_v41 }
  0xf7   :  { %v3153_v29 = vpack.c.bf16 %v2837_v27, %v161_v28 }
  0xf9   :  { %v2840_v30 = vpop.f32.mrb[6].mxu0  ;;  %3154 = vmatprep.subr.bf16.mxu1 %v3153_v29 }
  0xfa   :  { %v171_v31 = vpop.f32.mrb[7].mxu0  ;;  %3156 = vmatpush3.bf16.msra.mxu1 %v3153_v29 }
  0xfb   :  { %v3157_v32 = vpack.c.bf16 %v2840_v30, %v171_v31  ;;  %v661_v31 = vrot.slane %v3531_v43, %v660_v26 }
  0xfd   :  { %3158 = vmatprep.subr.bf16.mxu1 %v3157_v32 }
  0xfe   :  { %3160 = vmatpush3.bf16.msra.mxu1 %v3157_v32 }
 0x101   :  { %2858 = vmatmul.mubr.msk.f32.vlgmr.msra.gmra.mrb[0].mxu1 %vm184_vm1, %v3477_v33 }
 0x102   :  { %2860 = vmatprep.mubr.msk.f32.mxu1 %vm184_vm1, %v3482_v34 }
 0x105   :  { %2861 = vmatmul.mubr.msk.f32.gmra.mrb[2].mxu1 %vm184_vm1, %v3491_v35 }
 0x106   :  { %2863 = vmatprep.mubr.msk.f32.mxu1 %vm184_vm1, %v3496_v36 }
 0x109   :  { %2864 = vmatmul.mubr.msk.f32.gmra.mrb[4].mxu1 %vm184_vm1, %v3505_v37 }
 0x10a   :  { %2866 = vmatprep.mubr.msk.f32.mxu1 %vm184_vm1, %v3510_v38 }
 0x10d   :  { %2867 = vmatmul.mubr.msk.f32.gmra.mrb[6].mxu1 %vm184_vm1, %v3519_v39 }
 0x10e   :  { %2905 = vmatprep.mubr.msk.f32.mxu1 %vm184_vm1, %v3458_v14 }
 0x1d4   :  { %v2859_v45 = vpop.f32.mrb[0].mxu1 }
 0x1d5   :  { %v281_v46 = vadd.f32 %v2859_v45, %v183_v44  ;;  %v275_v47 = vpop.f32.mrb[1].mxu1 }
 0x1d6   :  { %v276_v48 = vadd.f32 %v275_v47, %v183_v44 }
 0x1d7   :  { %v315_v51 = vmax.f32 %v281_v46, 0.0 }
 0x1d8   :  { %v314_v49 = vmax.f32 %v276_v48, 0.0  ;;  %v2862_v50 = vpop.f32.mrb[2].mxu1 }
 0x1d9   :  { %v291_v52 = vadd.f32 %v2862_v50, %v183_v44  ;;  %v285_v53 = vpop.f32.mrb[3].mxu1 }
 0x1da   :  { %v286_v54 = vadd.f32 %v285_v53, %v183_v44  ;;  %2877 = vmatprep.mubr.msk.f32.mxu0 %vm50_vm0, %v314_v49  ;;  %v3373_v49 = vmov 0  }
 0x1db   :  { %2878 = vmatmul.mubr.msk.f32.vlgmr.msra.gmra.mrb[8].mxu0 %vm50_vm0, %v315_v51  ;;  %v317_v57 = vmax.f32 %v291_v52, 0.0  ;;  %3323 = vset.pattern.permute.xlu1 %v3373_v49 }
 0x1dc   :  { %v316_v55 = vmax.f32 %v286_v54, 0.0  ;;  %v2865_v56 = vpop.f32.mrb[4].mxu1  ;;  %3188 = vmatpush3.bf16.msra.mxu0 %v3185_v8 }
 0x1dd   :  { %v301_v58 = vadd.f32 %v2865_v56, %v183_v44  ;;  %v295_v59 = vpop.f32.mrb[5].mxu1  ;;  %3190 = vmatprep.subr.bf16.mxu0 %v3189_v10  ;;  %v672_v56 = vsub.s32 7, %v3525_v41 }
 0x1de   :  { %v296_v60 = vadd.f32 %v295_v59, %v183_v44  ;;  %2880 = vmatprep.mubr.msk.f32.mxu0 %vm50_vm0, %v316_v55 }
 0x1df   :  { %2881 = vmatmul.mubr.msk.f32.gmra.mrb[10].mxu0 %vm50_vm0, %v317_v57  ;;  %v319_v63 = vmax.f32 %v301_v58, 0.0  ;;  %v3625_v57 = vrot.slane %v3531_v43, %v672_v56 }
 0x1e0   :  { %v318_v61 = vmax.f32 %v296_v60, 0.0  ;;  %v2868_v62 = vpop.f32.mrb[6].mxu1  ;;  %3192 = vmatpush3.bf16.msra.mxu0 %v3189_v10 }
 0x1e1   :  { %v311_v0 = vadd.f32 %v2868_v62, %v183_v44  ;;  %v305_v1 = vpop.f32.mrb[7].mxu1 }
 0x1e2   :  { %v306_v2 = vadd.f32 %v305_v1, %v183_v44  ;;  %2883 = vmatprep.mubr.msk.f32.mxu0 %vm50_vm0, %v318_v61 }
 0x1e3   :  { %2884 = vmatmul.mubr.msk.f32.gmra.mrb[12].mxu0 %vm50_vm0, %v319_v63  ;;  %v321_v4 = vmax.f32 %v311_v0, 0.0 }
 0x1e4   :  { %v320_v3 = vmax.f32 %v306_v2, 0.0 }
 0x1e6   :  { %2886 = vmatprep.mubr.msk.f32.mxu0 %vm50_vm0, %v320_v3  ;;  %v575_v3 = vsub.s32 6, %v3525_v41 }
 0x1e7   :  { %2887 = vmatmul.mubr.msk.f32.gmra.mrb[14].mxu0 %vm50_vm0, %v321_v4 }
 0x1e8   :  { %v3637_v4 = vrot.slane %v3531_v43, %v575_v3 }
 0x2ae   :  { %v2879_v11 = vpop.f32.mrb[8].mxu0 }
 0x2af   :  { %v412_v12 = vpop.f32.mrb[9].mxu0 }
 0x2b0   :  { %v3169_v13 = vpack.c.bf16 %v2879_v11, %v412_v12 }
 0x2b2   :  { %v2882_v15 = vpop.f32.mrb[10].mxu0  ;;  %3170 = vmatprep.subr.bf16.mxu1 %v3169_v13 }
 0x2b3   :  { %v422_v16 = vpop.f32.mrb[11].mxu0  ;;  %3172 = vmatpush3.bf16.msra.mxu1 %v3169_v13  ;;  %v3646_v13 = vadd.s32 8, %v3525_v41 }
 0x2b4   :  { %v3173_v17 = vpack.c.bf16 %v2882_v15, %v422_v16  ;;  %v777_v15 = vstv %s776_s0  ;;  %v785_v16 = vstv %s2538_s27 }
 0x2b5   :  { %vm779_vm3 = vcmp.lt.s32.totalorder %v3646_v13, %v777_v15  ;;  %vm787_vm4 = vcmp.lt.s32.totalorder %v3646_v13, %v785_v16  ;;  %vm778_vm5 = vcmp.lt.s32.totalorder %v3525_v41, %v777_v15  ;;  %vm786_vm6 = vcmp.lt.s32.totalorder %v3525_v41, %v785_v16 }
 0x2b6   :  { %v2885_v18 = vpop.f32.mrb[12].mxu0  ;;  %3174 = vmatprep.subr.bf16.mxu1 %v3173_v17 }
 0x2b7   :  { %v432_v19 = vpop.f32.mrb[13].mxu0  ;;  %3176 = vmatpush3.bf16.msra.mxu1 %v3173_v17  ;;  %v3374_v17 = vmov 0.0  }
 0x2b8   :  { %v3177_v20 = vpack.c.bf16 %v2885_v18, %v432_v19  ;;  %v3653_v18 = vsel %vm779_vm3, 1.0, %v3374_v17  ;;  %v3656_v19 = vsel %vm787_vm4, 1.0, %v3374_v17 }
 0x2b9   :  { %vm793_vm7 = vcmp.gt.f32.partialorder %v3653_v18, 0.0  ;;  %vm832_vm8 = vcmp.gt.f32.partialorder %v3656_v19, 0.0 }
 0x2ba   :  { %v2888_v21 = vpop.f32.mrb[14].mxu0  ;;  %3178 = vmatprep.subr.bf16.mxu1 %v3177_v20 }
 0x2bb   :  { %v442_v22 = vpop.f32.mrb[15].mxu0  ;;  %3180 = vmatpush3.bf16.msra.mxu1 %v3177_v20  ;;  %v3659_v20 = vsel %vm778_vm5, 1.0, %v3374_v17 }
 0x2bc   :  { %v3181_v23 = vpack.c.bf16 %v2888_v21, %v442_v22  ;;  %v3662_v21 = vsel %vm786_vm6, 1.0, %v3374_v17  ;;  %vm792_vm10 = vcmp.gt.f32.partialorder %v3659_v20, 0.0  ;;  %vm2481_vm6 = vcmask 785408  }
 0x2bd   :  { %vm831_vm11 = vcmp.gt.f32.partialorder %v3662_v21, 0.0 }
 0x2be   :  { %3182 = vmatprep.subr.bf16.mxu1 %v3181_v23 }
 0x2bf   :  { %3184 = vmatpush3.bf16.msra.mxu1 %v3181_v23 }
 0x2c0   :  { %3208 = vmatprep.subr.bf16.mxu1 %v3185_v8 }
 0x2c2   :  { %2906 = vmatmul.mubr.msk.f32.vlgmr.msra.gmra.mrb[8].mxu1 %vm184_vm1, %v3477_v33 }
 0x2c3   :  { %2908 = vmatprep.mubr.msk.f32.mxu1 %vm184_vm1, %v3482_v34  ;;  %3210 = vmatpush3.bf16.msra.mxu1 %v3185_v8 }
 0x2c4   :  { %3212 = vmatprep.subr.bf16.mxu1 %v3189_v10 }
 0x2c6   :  { %2909 = vmatmul.mubr.msk.f32.gmra.mrb[10].mxu1 %vm184_vm1, %v3491_v35 }
 0x2c7   :  { %2911 = vmatprep.mubr.msk.f32.mxu1 %vm184_vm1, %v3496_v36  ;;  %3214 = vmatpush3.bf16.msra.mxu1 %v3189_v10 }
 0x2ca   :  { %2912 = vmatmul.mubr.msk.f32.gmra.mrb[12].mxu1 %vm184_vm1, %v3505_v37 }
 0x2cb   :  { %2914 = vmatprep.mubr.msk.f32.mxu1 %vm184_vm1, %v3510_v38 }
 0x2ce   :  { %2915 = vmatmul.mubr.msk.f32.gmra.mrb[14].mxu1 %vm184_vm1, %v3519_v39 }
 0x395   :  { %v2907_v27 = vpop.f32.mrb[8].mxu1 }
 0x396   :  { %v527_v28 = vadd.f32 %v2907_v27, %v3570_v25  ;;  %v521_v29 = vpop.f32.mrb[9].mxu1 }
 0x397   :  { %v522_v30 = vadd.f32 %v521_v29, %v3570_v25 }
 0x398   :  { %v3576_v32 = vmax.f32 %v527_v28, 0.0 }
 0x399   :  { %v3578_v33 = vmax.f32 %v522_v30, 0.0  ;;  %v2910_v34 = vpop.f32.mrb[10].mxu1 }
 0x39a   :  { %v537_v35 = vadd.f32 %v2910_v34, %v3570_v25  ;;  %v531_v36 = vpop.f32.mrb[11].mxu1  ;;  %v663_v44 = vmul.f32 %v661_v31, %v3576_v32 }
 0x39b   :  { %v532_v37 = vadd.f32 %v531_v36, %v3570_v25  ;;  %2925 = vmatprep.mubr.msk.f32.mxu0 %vm50_vm0, %v3578_v33  ;;  %v662_v38 = vmul.f32 %v661_v31, %v3578_v33  ;;  %v3199_v48 = vpack.c.bf16 %v3576_v32, %v3578_v33 }
 0x39c   :  { %v3585_v39 = vmax.f32 %v537_v35, 0.0  ;;  %2926 = vmatmul.mubr.msk.f32.vlgmr.msra.gmra.mrb[16].mxu0 %vm50_vm0, %v3576_v32  ;;  %v667_v47 = vsel %vm50_vm0, %v663_v44, 0.0 }
 0x39d   :  { %v3589_v40 = vmax.f32 %v532_v37, 0.0  ;;  %v664_v42 = vsel %vm50_vm0, %v662_v38, 0.0  ;;  %v2913_v50 = vpop.f32.mrb[12].mxu1 }
 0x39e   :  { %665 = vadd.xlane.f32.xlu0 %v664_v42  ;;  %v547_v51 = vadd.f32 %v2913_v50, %v3570_v25  ;;  %v541_v52 = vpop.f32.mrb[13].mxu1 }
 0x39f   :  { %v3601_v46 = vpack.c.bf16 %v3585_v39, %v3589_v40  ;;  %v542_v53 = vadd.f32 %v541_v52, %v3570_v25 }
 0x3a0   :  { %v3617_v55 = vmax.f32 %v547_v51, 0.0 }
 0x3a1   :  { %3195 = vmatprep.subr.msk.bf16.mxu0 %vm3595_vm2, %v3601_v46  ;;  %v3615_v54 = vmax.f32 %v542_v53, 0.0 }
 0x3a2   :  { %668 = vadd.xlane.f32.xlu0 %v667_v47  ;;  %3198 = vmatpush3.bf16.xpose.msk.msra.mxu0 %vm3595_vm2, %v3601_v46  ;;  %v1145_v0 = vmul.f32 %v661_v31, %v3617_v55 }
 0x3a3   :  { %3200 = vmatprep.subr.bf16.mxu0 %v3199_v48  ;;  %2957 = vmatprep.mubr.msk.f32.mxu1 %vm50_vm0, %v3615_v54  ;;  %v1144_v62 = vmul.f32 %v661_v31, %v3615_v54  ;;  %v3221_v2 = vpack.c.bf16 %v3617_v55, %v3615_v54 }
 0x3a4   :  { %2958 = vmatmul.mubr.msk.f32.vlgmr.msra.gmra.mrb[16].mxu1 %vm50_vm0, %v3617_v55  ;;  %v1149_v1 = vsel %vm50_vm0, %v1145_v0, 0.0 }
 0x3a5   :  { %v1146_v63 = vsel %vm50_vm0, %v1144_v62, 0.0  ;;  %3222 = vmatprep.subr.bf16.mxu1 %v3221_v2 }
 0x3a6   :  { %3224 = vmatpush3.bf16.msra.mxu1 %v3221_v2 }
 0x42b   :  { %v666_v58 = vpop.xlane.xlu0 %665 }
 0x42c   :  { %v674_v59 = vadd.f32 %v3625_v57, %v666_v58 }
 0x42e   :  { %678 = vperm.xlu1 %3323, %v674_v59  }
 0x42f   :  { %v669_v60 = vpop.xlane.xlu0 %668 }
 0x430   :  { %v675_v61 = vadd.f32 %v3625_v57, %v669_v60 }
 0x432   :  { %683 = vperm.xlu1 %3323, %v675_v61  }
 0x456   :  { %1147 = vadd.xlane.f32.xlu1 %v1146_v63 }
 0x45a   :  { %1150 = vadd.xlane.f32.xlu1 %v1149_v1 }
 0x46f   :  { %v2927_v5 = vpop.f32.mrb[16].mxu0 }
 0x470   :  { %v649_v6 = vpop.f32.mrb[17].mxu0  ;;  %v655_v8 = vadd.f32 %v2927_v5, %v3637_v4 }
 0x471   :  { %v650_v7 = vadd.f32 %v649_v6, %v3637_v4 }
 0x473   :  { %2932 = vmatprep.mubr.msk.f32.mxu0 %vm50_vm0, %v650_v7 }
 0x474   :  { %2933 = vmatmul.mubr.msk.f32.vlgmr.msra.gmra.mrb[18].mxu0 %vm50_vm0, %v655_v8 }
 0x475   :  { %3202 = vmatpush3.bf16.msra.mxu0 %v3199_v48 }
 0x476   :  { %3204 = vmatprep.subr.bf16.mxu0 %v3601_v46 }
 0x4ad   :  { %v679_v9 = vpop.permute.xlu1 %678 }
 0x4b1   :  { %v684_v10 = vpop.permute.xlu1 %683 }
 0x4e3   :  { %v1148_v11 = vpop.xlane.xlu1 %1147 }
 0x4e4   :  { %v1152_v12 = vadd.f32 %v1148_v11, %v3625_v57 }
 0x4e6   :  { %1156 = vperm.xlu1 %3323, %v1152_v12  }
 0x547   :  { %v2934_v22 = vpop.f32.mrb[18].mxu0 }
 0x548   :  { %v770_v23 = vadd.f32 %v2934_v22, %v684_v10  ;;  %v764_v24 = vpop.f32.mrb[19].mxu0 }
 0x549   :  { %v765_v26 = vadd.f32 %v764_v24, %v679_v9 }
 0x54a   :  { %v799_v27 = vsel %vm793_vm7, %v770_v23, -1e+30  ;;  %v838_v28 = vsel %vm832_vm8, %v770_v23, -1e+30 }
 0x54b   :  { %v802_v29 = vsel %vm800_vm9, %v799_v27, -inf  ;;  %v840_v30 = vsel %vm800_vm9, %v838_v28, -inf  ;;  %v798_v31 = vsel %vm792_vm10, %v765_v26, -1e+30  ;;  %v837_v34 = vsel %vm831_vm11, %v765_v26, -1e+30 }
 0x54c   :  { %v801_v35 = vsel %vm800_vm9, %v798_v31, -inf  ;;  %v839_v36 = vsel %vm800_vm9, %v837_v34, -inf }
 0x54d   :  { %v803_v37 = vmax.f32 %v801_v35, %v802_v29  ;;  %v841_v38 = vmax.f32 %v839_v36, %v840_v30 }
 0x54f   :  { %v804_v42 = vrot.slane %v803_v37, 4  ;;  %v842_v44 = vrot.slane %v841_v38, 4 }
 0x551   :  { %v805_v47 = vmax.f32 %v803_v37, %v804_v42  ;;  %v843_v48 = vmax.f32 %v841_v38, %v842_v44 }
 0x553   :  { %v806_v50 = vrot.slane %v805_v47, 2  ;;  %v844_v51 = vrot.slane %v843_v48, 2 }
 0x555   :  { %v807_v52 = vmax.f32 %v805_v47, %v806_v50  ;;  %v845_v53 = vmax.f32 %v843_v48, %v844_v51 }
 0x557   :  { %v808_v56 = vrot.slane %v807_v52, 1  ;;  %v846_v58 = vrot.slane %v845_v53, 1 }
 0x559   :  { %v809_v59 = vmax.f32 %v807_v52, %v808_v56  ;;  %v847_v60 = vmax.f32 %v845_v53, %v846_v58  ;;  %v2916_v56 = vpop.f32.mrb[14].mxu1 }
 0x55b   :  { %v810_v61 = vsub.f32 %v798_v31, %v809_v59  ;;  %v811_v62 = vsub.f32 %v799_v27, %v809_v59  ;;  %v848_v63 = vsub.f32 %v837_v34, %v847_v60  ;;  %v849_v0 = vsub.f32 %v838_v28, %v847_v60  ;;  %v551_v59 = vpop.f32.mrb[15].mxu1 }
 0x55c   :  { %v2959_v60 = vpop.f32.mrb[16].mxu1 }
 0x55d   :  { %v812_v1 = vmul.f32 1.442695, %v810_v61  ;;  %v814_v2 = vmul.f32 1.442695, %v811_v62  ;;  %v850_v3 = vmul.f32 1.442695, %v848_v63  ;;  %v1151_v62 = vpop.xlane.xlu1 %1150 }
 0x55e   :  { %v852_v5 = vmul.f32 1.442695, %v849_v0  ;;  %v1135_v61 = vpop.f32.mrb[17].mxu1  ;;  %v1153_v63 = vadd.f32 %v1151_v62, %v3625_v57  ;;  %v557_v0 = vadd.f32 %v2916_v56, %v3570_v25 }
 0x55f   :  { %3325 = vpow2.f32 %v812_v1  ;;  %v552_v1 = vadd.f32 %v551_v59, %v3570_v25  ;;  %v1136_v25 = vadd.f32 %v1135_v61, %v3637_v4 }
 0x560   :  { %3327 = vpow2.f32 %v814_v2 }
 0x561   :  { %3329 = vpow2.f32 %v850_v3  ;;  %v3684_v2 = vmax.f32 %v552_v1, 0.0 }
 0x562   :  { %3331 = vpow2.f32 %v852_v5 }
 0x569   :  { %v3326_v6 = vpop.eup %3325 }
 0x56a   :  { %v3328_v7 = vpop.eup %3327  ;;  %v816_v8 = vsel %vm800_vm9, %v3326_v6, 0.0 }
 0x56b   :  { %v3330_v9 = vpop.eup %3329  ;;  %v817_v10 = vsel %vm800_vm9, %v3328_v7, 0.0 }
 0x56c   :  { %v3332_v11 = vpop.eup %3331  ;;  %v818_v12 = vadd.f32 %v817_v10, %v816_v8  ;;  %v854_v15 = vsel %vm800_vm9, %v3330_v9, 0.0  ;;  %v1252_v8 = vstv %s2551_s28 }
 0x56d   :  { %v855_v16 = vsel %vm800_vm9, %v3332_v11, 0.0  ;;  %vm1254_vm12 = vcmp.lt.s32.totalorder %v3646_v13, %v1252_v8  ;;  %vm1253_vm14 = vcmp.lt.s32.totalorder %v3525_v41, %v1252_v8 }
 0x56e   :  { %v819_v22 = vrot.slane %v818_v12, 4  ;;  %v856_v23 = vadd.f32 %v855_v16, %v854_v15  ;;  %v3716_v45 = vsel %vm1254_vm12, 1.0, %v3374_v17  ;;  %v3722_v10 = vsel %vm1253_vm14, 1.0, %v3374_v17 }
 0x56f   :  { %vm1267_vm4 = vcmp.gt.f32.partialorder %v3722_v10, 0.0 }
 0x570   :  { %v820_v24 = vadd.f32 %v819_v22, %v818_v12  ;;  %v857_v26 = vrot.slane %v856_v23, 4 }
 0x572   :  { %v858_v27 = vadd.f32 %v857_v26, %v856_v23  ;;  %v821_v28 = vrot.slane %v820_v24, 2 }
 0x574   :  { %v859_v29 = vrot.slane %v858_v27, 2  ;;  %v822_v30 = vadd.f32 %v821_v28, %v820_v24 }
 0x576   :  { %v860_v31 = vadd.f32 %v859_v29, %v858_v27  ;;  %v823_v34 = vrot.slane %v822_v30, 1 }
 0x578   :  { %v861_v35 = vrot.slane %v860_v31, 1  ;;  %v824_v36 = vadd.f32 %v823_v34, %v822_v30 }
 0x57a   :  { %v862_v37 = vadd.f32 %v861_v35, %v860_v31  ;;  %v825_v38 = vadd.f32 1e-13, %v824_v36 }
 0x57c   :  { %v863_v42 = vadd.f32 1e-13, %v862_v37  ;;  %3333 = vrcp.f32 %v825_v38 }
 0x57e   :  { %3335 = vrcp.f32 %v863_v42 }
 0x586   :  { %v3334_v44 = vpop.eup %3333 }
 0x587   :  { %v827_v47 = vmul.f32 %v3334_v44, %v3326_v6  ;;  %v828_v48 = vmul.f32 %v3334_v44, %v3328_v7 }
 0x588   :  { %v3336_v50 = vpop.eup %3335 }
 0x589   :  { %v865_v51 = vmul.f32 %v3336_v50, %v3330_v9  ;;  %v829_v52 = vmul.f32 %v3659_v20, %v827_v47  ;;  %v866_v53 = vmul.f32 %v3336_v50, %v3332_v11  ;;  %v830_v58 = vmul.f32 %v3653_v18, %v828_v48 }
 0x58a   :  { %v3682_v20 = vmax.f32 %v557_v0, 0.0  ;;  %v1260_v9 = vstv %s2554_s29 }
 0x58b   :  { %869 = vxpose.xlu0.b32.start [1/2] (short) (narrow) %v829_v52, 16  ;;  %v867_v5 = vmul.f32 %v3662_v21, %v865_v51  ;;  %v1141_v21 = vadd.f32 %v2959_v60, %v3637_v4  ;;  %vm1262_vm13 = vcmp.lt.s32.totalorder %v3646_v13, %v1260_v9  ;;  %vm1261_vm15 = vcmp.lt.s32.totalorder %v3525_v41, %v1260_v9  ;;  %v1157_v13 = vpop.permute.xlu1 %1156 }
 0x58c   :  { %v3215_v18 = vpack.c.bf16 %v3682_v20, %v3684_v2  ;;  %v3719_v4 = vsel %vm1262_vm13, 1.0, %v3374_v17  ;;  %v3725_v11 = vsel %vm1261_vm15, 1.0, %v3374_v17 }
 0x58d   :  { %vm1306_vm3 = vcmp.gt.f32.partialorder %v3719_v4, 0.0  ;;  %vm1305_vm5 = vcmp.gt.f32.partialorder %v3725_v11, 0.0 }
 0x58f   :  { %870 = vxpose.xlu0.b32.end [2/2] (short) (narrow) %v830_v58, 16 }
 0x5b8   :  { %3324 = vset.pattern.permute.xlu0 %v3373_v49  ;;  %v868_v49 = vmul.f32 %v3656_v19, %v866_v53 }
 0x5b9   :  { %1161 = vperm.xlu0 %3324, %v1153_v63  }
 0x60b   :  { %v885_v3 = vpop.trf.xlu0 }
 0x60c   :  { %2939 = vmatprep.mubr.msk.f32.mxu0 %vm800_vm9, %v885_v3 }
 0x60f   :  { %v886_v57 = vpop.trf.xlu0 }
 0x610   :  { %2940 = vmatmul.mubr.msk.f32.vlgmr.msra.gmra.mrb[20].mxu0 %vm800_vm9, %v886_v57 }
 0x611   :  { %3206 = vmatpush3.bf16.msra.mxu0 %v3601_v46  ;;  %2946 = vmatprep.mubr.msk.f32.mxu0 %vm800_vm9, %v867_v5 }
 0x612   :  { %3217 = vmatprep.subr.msk.bf16.mxu0 %vm3595_vm2, %v3215_v18 }
 0x614   :  { %2947 = vmatmul.mubr.msk.f32.vlgmr.msra.gmra.mrb[22].mxu0 %vm800_vm9, %v868_v49 }
 0x615   :  { %2964 = vmatprep.mubr.msk.f32.mxu0 %vm50_vm0, %v1136_v25 }
 0x61a   :  { %3220 = vmatpush3.bf16.xpose.msk.msra.mxu0 %vm3595_vm2, %v3215_v18  ;;  %vm1268_vm2 = vcmp.gt.f32.partialorder %v3716_v45, 0.0 }
 0x61b   :  { %3226 = vmatprep.subr.bf16.mxu0 %v3215_v18 }
 0x621   :  { %2965 = vmatmul.mubr.msk.f32.vlgmr.msra.gmra.mrb[24].mxu0 %vm50_vm0, %v1141_v21 }
 0x622   :  { %3228 = vmatpush3.bf16.msra.mxu0 %v3215_v18 }
 0x638   :  { %v1162_v12 = vpop.permute.xlu0 %1161 }
 0x6e3   :  { %v3703_v46 = vpop.f32.mrb[20].mxu0 }
 0x6e4   :  { %v3705_v19 = vpop.f32.mrb[21].mxu0 }
 0x6e7   :  { %v3707_v6 = vpop.f32.mrb[22].mxu0 }
 0x6e8   :  { %v3709_v7 = vpop.f32.mrb[23].mxu0 }
 0x6f4   :  { %v2966_v15 = vpop.f32.mrb[24].mxu0 }
 0x6f5   :  { %v1248_v16 = vadd.f32 %v2966_v15, %v1162_v12  ;;  %v1242_v22 = vpop.f32.mrb[25].mxu0 }
 0x6f6   :  { %v1243_v23 = vadd.f32 %v1242_v22, %v1157_v13 }
 0x6f7   :  { %v1274_v24 = vsel %vm1268_vm2, %v1248_v16, -1e+30  ;;  %v1312_v26 = vsel %vm1306_vm3, %v1248_v16, -1e+30 }
 0x6f8   :  { %v1276_v27 = vsel %vm800_vm9, %v1274_v24, -inf  ;;  %v1314_v17 = vsel %vm800_vm9, %v1312_v26, -inf  ;;  %v1273_v28 = vsel %vm1267_vm4, %v1243_v23, -1e+30  ;;  %v1311_v29 = vsel %vm1305_vm5, %v1243_v23, -1e+30 }
 0x6f9   :  { %v1275_v30 = vsel %vm800_vm9, %v1273_v28, -inf  ;;  %v1313_v31 = vsel %vm800_vm9, %v1311_v29, -inf }
 0x6fa   :  { %v1277_v34 = vmax.f32 %v1275_v30, %v1276_v27  ;;  %v1315_v35 = vmax.f32 %v1313_v31, %v1314_v17 }
 0x6fc   :  { %v1278_v36 = vrot.slane %v1277_v34, 4  ;;  %v1316_v37 = vrot.slane %v1315_v35, 4 }
 0x6fe   :  { %v1279_v38 = vmax.f32 %v1277_v34, %v1278_v36  ;;  %v1317_v42 = vmax.f32 %v1315_v35, %v1316_v37 }
 0x700   :  { %v1280_v44 = vrot.slane %v1279_v38, 2  ;;  %v1318_v47 = vrot.slane %v1317_v42, 2 }
 0x702   :  { %v1281_v48 = vmax.f32 %v1279_v38, %v1280_v44  ;;  %v1319_v50 = vmax.f32 %v1317_v42, %v1318_v47 }
 0x704   :  { %v1282_v51 = vrot.slane %v1281_v48, 1  ;;  %v1320_v52 = vrot.slane %v1319_v50, 1 }
 0x706   :  { %v1283_v53 = vmax.f32 %v1281_v48, %v1282_v51  ;;  %v1321_v56 = vmax.f32 %v1319_v50, %v1320_v52  ;;  %v2565_v51 = vld [vmem:[%s3960_s3 + $0xc0] sm:$0xff]  ;;  %v2566_v52 = vld [vmem:[%s3960_s3 + $0xc8] sm:$0xff] }
 0x708   :  { %v1284_v58 = vsub.f32 %v1273_v28, %v1283_v53  ;;  %v1285_v59 = vsub.f32 %v1274_v24, %v1283_v53  ;;  %v1322_v60 = vsub.f32 %v1311_v29, %v1321_v56  ;;  %v1323_v61 = vsub.f32 %v1312_v26, %v1321_v56 }
 0x709   :  { %v3229_v56 = vpack.c.bf16 %v2566_v52, %v2565_v51 }
 0x70a   :  { %v1286_v62 = vmul.f32 1.442695, %v1284_v58  ;;  %v1288_v63 = vmul.f32 1.442695, %v1285_v59  ;;  %v1324_v0 = vmul.f32 1.442695, %v1322_v60 }
 0x70b   :  { %v1326_v1 = vmul.f32 1.442695, %v1323_v61  ;;  %3230 = vmatprep.subr.bf16.mxu1 %v3229_v56  ;;  %v2562_v60 = vld [vmem:[%s3960_s3 + $0xa8] sm:$0xff] }
 0x70c   :  { %3337 = vpow2.f32 %v1286_v62  ;;  %v2563_v62 = vld [vmem:[%s3960_s3 + $0xb0] sm:$0xff] }
 0x70d   :  { %3339 = vpow2.f32 %v1288_v63  ;;  %v2564_v63 = vld [vmem:[%s3960_s3 + $0xb8] sm:$0xff] }
 0x70e   :  { %3341 = vpow2.f32 %v1324_v0  ;;  %v3241_v0 = vpack.c.bf16 %v2564_v63, %v2563_v62  ;;  %v2601_v62 = vld [vmem:[%s3960_s3 + $0x60] sm:$0xff]  ;;  %v2602_v63 = vld [vmem:[%s3960_s3 + $0x68] sm:$0xff] }
 0x70f   :  { %3343 = vpow2.f32 %v1326_v1 }
 0x716   :  { %v3338_v3 = vpop.eup %3337 }
 0x717   :  { %v3340_v18 = vpop.eup %3339  ;;  %v1290_v5 = vsel %vm800_vm9, %v3338_v3, 0.0 }
 0x718   :  { %v3342_v57 = vpop.eup %3341  ;;  %v1291_v25 = vsel %vm800_vm9, %v3340_v18, 0.0 }
 0x719   :  { %v3344_v49 = vpop.eup %3343  ;;  %v1292_v21 = vadd.f32 %v1291_v25, %v1290_v5  ;;  %v1328_v8 = vsel %vm800_vm9, %v3342_v57, 0.0  ;;  %v2586_v5 = vld [vmem:[%s3960_s3 + $0xe8] sm:$0xff]  ;;  %v2597_v25 = vld [vmem:[%s3960_s3 + $0x40] sm:$0xff] }
 0x71a   :  { %v1329_v9 = vsel %vm800_vm9, %v3344_v49, 0.0 }
 0x71b   :  { %v1293_v12 = vrot.slane %v1292_v21, 4  ;;  %v1330_v15 = vadd.f32 %v1329_v9, %v1328_v8 }
 0x71d   :  { %v1294_v13 = vadd.f32 %v1293_v12, %v1292_v21  ;;  %v1331_v16 = vrot.slane %v1330_v15, 4  ;;  %v2587_v12 = vld [vmem:[%s3960_s3 + $0xf0] sm:$0xff] }
 0x71f   :  { %v1295_v22 = vrot.slane %v1294_v13, 2  ;;  %v1332_v23 = vadd.f32 %v1331_v16, %v1330_v15  ;;  %v2588_v15 = vld [vmem:[%s3960_s3 + $0xf8] sm:$0xff]  ;;  %v1781_v16 = vmul.f32 %v3709_v7, %v3578_v33 }
 0x721   :  { %v1333_v24 = vrot.slane %v1332_v23, 2  ;;  %v1296_v26 = vadd.f32 %v1295_v22, %v1294_v13  ;;  %v3249_v13 = vpack.c.bf16 %v2588_v15, %v2587_v12  ;;  %v1782_v22 = vmul.f32 %v3707_v6, %v3576_v32  ;;  %v3902_v12 = vld [vmem:[%s3959_s2 + $0x28] sm:$0xff]  ;;  %v3909_v15 = vld [vmem:[%s3959_s2 + $0x30] sm:$0xff] }
 0x723   :  { %v1334_v27 = vadd.f32 %v1333_v24, %v1332_v23  ;;  %v1297_v17 = vrot.slane %v1296_v26, 1  ;;  %v1783_v23 = vmul.f32 %v3705_v19, %v3589_v40  ;;  %v1784_v24 = vmul.f32 %v3703_v46, %v3585_v39 }
 0x725   :  { %v1335_v28 = vrot.slane %v1334_v27, 1  ;;  %v1298_v29 = vadd.f32 %v1297_v17, %v1296_v26 }
 0x727   :  { %v1336_v30 = vadd.f32 %v1335_v28, %v1334_v27  ;;  %v1299_v31 = vadd.f32 1e-13, %v1298_v29 }
 0x729   :  { %v1337_v34 = vadd.f32 1e-13, %v1336_v30  ;;  %3345 = vrcp.f32 %v1299_v31 }
 0x72b   :  { %3347 = vrcp.f32 %v1337_v34 }
 0x733   :  { %v3346_v35 = vpop.eup %3345 }
 0x734   :  { %v1301_v36 = vmul.f32 %v3346_v35, %v3338_v3  ;;  %v1302_v37 = vmul.f32 %v3346_v35, %v3340_v18  ;;  %v2585_v18 = vld [vmem:[%s3960_s3 + $0xe0] sm:$0xff] }
 0x735   :  { %v3348_v38 = vpop.eup %3347 }
 0x736   :  { %v1339_v42 = vmul.f32 %v3348_v38, %v3342_v57  ;;  %v1303_v44 = vmul.f32 %v3722_v10, %v1301_v36  ;;  %v1340_v47 = vmul.f32 %v3348_v38, %v3344_v49  ;;  %v1304_v53 = vmul.f32 %v3716_v45, %v1302_v37  ;;  %v2561_v45 = vld [vmem:[%s3960_s3 + $0xa0] sm:$0xff]  ;;  %v2598_v49 = vld [vmem:[%s3960_s3 + $0x48] sm:$0xff] }
 0x737   :  { %v3237_v61 = vpack.c.bf16 %v2562_v60, %v2561_v45  ;;  %v3245_v57 = vpack.c.bf16 %v2586_v5, %v2585_v18  ;;  %v3253_v21 = vpack.c.bf16 %v2598_v49, %v2597_v25  ;;  %v3277_v18 = vpack.c.bf16 %v2602_v63, %v2601_v62  ;;  %v2603_v5 = vld [vmem:[%s3960_s3 + $0x70] sm:$0xff]  ;;  %v3874_v49 = vld [vmem:[%s3959_s2 + $0x8] sm:$0xff] }
 0x738   :  { %v1341_v48 = vmul.f32 %v3725_v11, %v1339_v42  ;;  %1343 = vxpose.xlu1.b32.start [1/2] (short) (narrow) %v1303_v44, 16  ;;  %v1342_v50 = vmul.f32 %v3719_v4, %v1340_v47  ;;  %v2567_v4 = vld [vmem:[%s3960_s3 + $0xd0] sm:$0xff]  ;;  %v2568_v11 = vld [vmem:[%s3960_s3 + $0xd8] sm:$0xff] }
 0x739   :  { %v3233_v58 = vpack.c.bf16 %v2568_v11, %v2567_v4  ;;  %3254 = vmatprep.subr.bf16.mxu0 %v3253_v21 }
 0x73a   :  { %2978 = vmatprep.mubr.msk.f32.mxu0 %vm800_vm9, %v1341_v48 }
 0x73b   :  { %2979 = vmatmul.mubr.msk.f32.vlgmr.msra.gmra.mrb[26].mxu0 %vm800_vm9, %v1342_v50 }
 0x73c   :  { %1344 = vxpose.xlu1.b32.end [2/2] (short) (narrow) %v1304_v53, 16  ;;  %3256 = vmatpush3.bf16.msra.mxu0 %v3253_v21  ;;  %v3349_v53 = vld [vmem:[%s3959_s2] sm:$0xff]  ;;  %v3881_v21 = vld [vmem:[%s3959_s2 + $0x10] sm:$0xff] }
 0x7b8   :  { %v1359_v10 = vpop.trf.xlu1 }
 0x7b9   :  { %2971 = vmatprep.mubr.msk.f32.mxu1 %vm800_vm9, %v1359_v10 }
 0x7bc   :  { %v1360_v59 = vpop.trf.xlu1 }
 0x7bd   :  { %2972 = vmatmul.mubr.msk.f32.vlgmr.msra.gmra.mrb[18].mxu1 %vm800_vm9, %v1360_v59 }
 0x7be   :  { %3232 = vmatpush3.bf16.msra.mxu1 %v3229_v56  ;;  %2989 = vmatprep.mubr.msk.f32.mxu1 %vm50_vm0, %v3709_v7 }
 0x7bf   :  { %3234 = vmatprep.subr.bf16.mxu1 %v3233_v58 }
 0x7c2   :  { %3236 = vmatpush3.bf16.msra.mxu1 %v3233_v58 }
 0x7c3   :  { %3238 = vmatprep.subr.bf16.mxu1 %v3237_v61 }
 0x7c5   :  { %2990 = vmatmul.mubr.msk.f32.vlgmr.msra.gmra.mrb[20].mxu1 %vm50_vm0, %v3707_v6 }
 0x7c6   :  { %2992 = vmatprep.mubr.msk.f32.mxu1 %vm50_vm0, %v3705_v19  ;;  %3240 = vmatpush3.bf16.msra.mxu1 %v3237_v61 }
 0x7c7   :  { %3242 = vmatprep.subr.bf16.mxu1 %v3241_v0 }
 0x7c9   :  { %2993 = vmatmul.mubr.msk.f32.gmra.mrb[22].mxu1 %vm50_vm0, %v3703_v46 }
 0x7ca   :  { %3244 = vmatpush3.bf16.msra.mxu1 %v3241_v0 }
 0x7cb   :  { %3246 = vmatprep.subr.bf16.mxu1 %v3245_v57 }
 0x80e   :  { %v2980_v1 = vpop.f32.mrb[26].mxu0 }
 0x80f   :  { %v1528_v3 = vpop.f32.mrb[27].mxu0  ;;  %v1786_v7 = vmul.f32 %v2980_v1, %v3617_v55 }
 0x810   :  { %2995 = vmatprep.mubr.msk.f32.mxu1 %vm50_vm0, %v1528_v3 }
 0x811   :  { %2996 = vmatmul.mubr.msk.f32.gmra.mrb[24].mxu1 %vm50_vm0, %v2980_v1 }
 0x890   :  { %v2973_v8 = vpop.f32.mrb[18].mxu1 }
 0x891   :  { %v1447_v9 = vpop.f32.mrb[19].mxu1 }
 0x892   :  { %2998 = vmatprep.mubr.msk.f32.mxu1 %vm50_vm0, %v1447_v9 }
 0x893   :  { %2999 = vmatmul.mubr.msk.f32.gmra.mrb[26].mxu1 %vm50_vm0, %v2973_v8 }
 0x894   :  { %3009 = vmatprep.mubr.msk.f32.mxu1 %vm50_vm0, %v3578_v33  ;;  %v1785_v33 = vmul.f32 %v1528_v3, %v3615_v54 }
 0x897   :  { %3010 = vmatmul.mubr.msk.f32.vlgmr.msra.gmra.mrb[20].mxu1 %vm50_vm0, %v3576_v32  ;;  %v1787_v32 = vmul.f32 %v1447_v9, %v3684_v2  ;;  %v3895_v9 = vld [vmem:[%s3959_s2 + $0x20] sm:$0xff] }
 0x898   :  { %3012 = vmatprep.mubr.msk.f32.mxu1 %vm50_vm0, %v3589_v40  ;;  %3248 = vmatpush3.bf16.msra.mxu1 %v3245_v57  ;;  %v1788_v40 = vmul.f32 %v2973_v8, %v3682_v20  ;;  %v2604_v57 = vld [vmem:[%s3960_s3 + $0x78] sm:$0xff] }
 0x899   :  { %3250 = vmatprep.subr.bf16.mxu1 %v3249_v13  ;;  %v3281_v25 = vpack.c.bf16 %v2604_v57, %v2603_v5  ;;  %v3888_v8 = vld [vmem:[%s3959_s2 + $0x18] sm:$0xff] }
 0x89b   :  { %3013 = vmatmul.mubr.msk.f32.gmra.mrb[22].mxu1 %vm50_vm0, %v3585_v39  ;;  %v2599_v39 = vld [vmem:[%s3960_s3 + $0x50] sm:$0xff] }
 0x89c   :  { %3015 = vmatprep.mubr.msk.f32.mxu1 %vm50_vm0, %v3615_v54  ;;  %3252 = vmatpush3.bf16.msra.mxu1 %v3249_v13  ;;  %v2600_v54 = vld [vmem:[%s3960_s3 + $0x58] sm:$0xff] }
 0x89d   :  { %v3916_v13 = vld [vmem:[%s3959_s2 + $0x38] sm:$0xff]  ;;  %s3375_s2 = smov 32  }
 0x89f   :  { %3016 = vmatmul.mubr.msk.f32.gmra.mrb[24].mxu1 %vm50_vm0, %v3617_v55  ;;  %v3257_v55 = vpack.c.bf16 %v2600_v54, %v2599_v39 }
 0x8a0   :  { %3018 = vmatprep.mubr.msk.f32.mxu1 %vm50_vm0, %v3684_v2  ;;  %v1933_v2 = vsub.s32 4, %v3525_v41 }
 0x8a1   :  { %3258 = vmatprep.subr.bf16.mxu0 %v3257_v55 }
 0x8a2   :  { %3260 = vmatpush3.bf16.msra.mxu0 %v3257_v55 }
 0x8a3   :  { %3019 = vmatmul.mubr.msk.f32.gmra.mrb[26].mxu1 %vm50_vm0, %v3682_v20  ;;  %v1934_v20 = vrot.slane %v3531_v43, %v1933_v2 }
 0x8a4   :  { %3029 = vmatprep.mubr.msk.f32.mxu1 %vm50_vm0, %v1781_v16  ;;  %v2092_v16 = vsub.s32 2, %v3525_v41 }
 0x8a7   :  { %3030 = vmatmul.mubr.msk.f32.vlgmr.msra.gmra.mrb[20].mxu1 %vm50_vm0, %v1782_v22  ;;  %v3357_v22 = vld [vmem:[%s3961_s4] sm:$0xff]  ;;  %s3376_s4 = smov 64  }
 0x8a8   :  { %3032 = vmatprep.mubr.msk.f32.mxu1 %vm50_vm0, %v1783_v23  ;;  %v2093_v23 = vrot.slane %v3357_v22, %v2092_v16 }
 0x8ab   :  { %3033 = vmatmul.mubr.msk.f32.gmra.mrb[22].mxu1 %vm50_vm0, %v1784_v24 }
 0x8ac   :  { %3035 = vmatprep.mubr.msk.f32.mxu1 %vm50_vm0, %v1785_v33 }
 0x8af   :  { %3036 = vmatmul.mubr.msk.f32.gmra.mrb[24].mxu1 %vm50_vm0, %v1786_v7 }
 0x8b0   :  { %3038 = vmatprep.mubr.msk.f32.mxu1 %vm50_vm0, %v1787_v32 }
 0x8b3   :  { %3039 = vmatmul.mubr.msk.f32.gmra.mrb[26].mxu1 %vm50_vm0, %v1788_v40 }
 0x8b4   :  { %3125 = vmatprep.mubr.msk.f32.mxu1 %vm184_vm1, %v3458_v14 }
 0x97a   :  { %v3031_v46 = vpop.f32.mrb[20].mxu1 }
 0x97b   :  { %v1936_v19 = vadd.f32 %v3031_v46, %v1934_v20  ;;  %v1884_v6 = vpop.f32.mrb[21].mxu1 }
 0x97c   :  { %v1935_v26 = vadd.f32 %v1934_v20, %v1884_v6 }
 0x97d   :  { %v1944_v17 = vmax.f32 %v1936_v19, 0.0 }
 0x97e   :  { %v1943_v14 = vmax.f32 %v1935_v26, 0.0  ;;  %v3034_v27 = vpop.f32.mrb[22].mxu1 }
 0x97f   :  { %v1938_v28 = vadd.f32 %v3034_v27, %v1934_v20  ;;  %v1894_v29 = vpop.f32.mrb[23].mxu1 }
 0x980   :  { %v1937_v30 = vadd.f32 %v1934_v20, %v1894_v29  ;;  %3049 = vmatprep.mubr.msk.f32.mxu0 %vm50_vm0, %v1943_v14 }
 0x981   :  { %3050 = vmatmul.mubr.msk.f32.vlgmr.msra.gmra.mrb[28].mxu0 %vm50_vm0, %v1944_v17  ;;  %v1946_v35 = vmax.f32 %v1938_v28, 0.0 }
 0x982   :  { %v1945_v31 = vmax.f32 %v1937_v30, 0.0  ;;  %v3037_v34 = vpop.f32.mrb[24].mxu1 }
 0x983   :  { %v1940_v36 = vadd.f32 %v3037_v34, %v1934_v20  ;;  %v1904_v37 = vpop.f32.mrb[25].mxu1 }
 0x984   :  { %v1939_v43 = vadd.f32 %v1934_v20, %v1904_v37  ;;  %3052 = vmatprep.mubr.msk.f32.mxu0 %vm50_vm0, %v1945_v31 }
 0x985   :  { %3053 = vmatmul.mubr.msk.f32.gmra.mrb[30].mxu0 %vm50_vm0, %v1946_v35  ;;  %v1948_v44 = vmax.f32 %v1940_v36, 0.0 }
 0x986   :  { %v1947_v38 = vmax.f32 %v1939_v43, 0.0  ;;  %v3040_v42 = vpop.f32.mrb[26].mxu1 }
 0x987   :  { %v1942_v47 = vadd.f32 %v3040_v42, %v1934_v20  ;;  %v1914_v48 = vpop.f32.mrb[27].mxu1 }
 0x988   :  { %v1941_v50 = vadd.f32 %v1934_v20, %v1914_v48  ;;  %3055 = vmatprep.mubr.msk.f32.mxu0 %vm50_vm0, %v1947_v38 }
 0x989   :  { %3056 = vmatmul.mubr.msk.f32.gmra.mrb[32].mxu0 %vm50_vm0, %v1948_v44  ;;  %v1950_v52 = vmax.f32 %v1942_v47, 0.0 }
 0x98a   :  { %v1949_v51 = vmax.f32 %v1941_v50, 0.0 }
 0x98c   :  { %3058 = vmatprep.mubr.msk.f32.mxu0 %vm50_vm0, %v1949_v51 }
 0x98d   :  { %3059 = vmatmul.mubr.msk.f32.gmra.mrb[34].mxu0 %vm50_vm0, %v1950_v52 }
 0x98e   :  { %3077 = vmatprep.mubr.msk.f32.mxu0 %vm184_vm1, %v3349_v53 }
 0xa54   :  { %v3051_v56 = vpop.f32.mrb[28].mxu0 }
 0xa55   :  { %v2051_v10 = vpop.f32.mrb[29].mxu0 }
 0xa56   :  { %v3261_v4 = vpack.c.bf16 %v3051_v56, %v2051_v10  ;;  %v2338_v10 = vsub.s32 3, %v3525_v41 }
 0xa58   :  { %v3054_v11 = vpop.f32.mrb[30].mxu0  ;;  %3262 = vmatprep.subr.bf16.mxu0 %v3261_v4 }
 0xa59   :  { %v2061_v58 = vpop.f32.mrb[31].mxu0  ;;  %3264 = vmatpush3.bf16.msra.mxu0 %v3261_v4  ;;  %v2339_v4 = vrot.slane %v3357_v22, %v2338_v10 }
 0xa5a   :  { %v3265_v59 = vpack.c.bf16 %v3054_v11, %v2061_v58 }
 0xa5c   :  { %v3057_v45 = vpop.f32.mrb[32].mxu0  ;;  %3266 = vmatprep.subr.bf16.mxu0 %v3265_v59 }
 0xa5d   :  { %v2071_v60 = vpop.f32.mrb[33].mxu0  ;;  %3268 = vmatpush3.bf16.msra.mxu0 %v3265_v59 }
 0xa5e   :  { %v3269_v61 = vpack.c.bf16 %v3057_v45, %v2071_v60 }
 0xa60   :  { %v3060_v0 = vpop.f32.mrb[34].mxu0  ;;  %3270 = vmatprep.subr.bf16.mxu0 %v3269_v61 }
 0xa61   :  { %v2081_v1 = vpop.f32.mrb[35].mxu0  ;;  %3272 = vmatpush3.bf16.msra.mxu0 %v3269_v61 }
 0xa62   :  { %v3273_v3 = vpack.c.bf16 %v3060_v0, %v2081_v1 }
 0xa64   :  { %3274 = vmatprep.subr.bf16.mxu0 %v3273_v3 }
 0xa65   :  { %3276 = vmatpush3.bf16.msra.mxu0 %v3273_v3 }
 0xa66   :  { %3278 = vmatprep.subr.bf16.mxu0 %v3277_v18 }
 0xa68   :  { %3078 = vmatmul.mubr.msk.f32.vlgmr.msra.gmra.mrb[36].mxu0 %vm184_vm1, %v3874_v49 }
 0xa69   :  { %3080 = vmatprep.mubr.msk.f32.mxu0 %vm184_vm1, %v3881_v21  ;;  %3280 = vmatpush3.bf16.msra.mxu0 %v3277_v18 }
 0xa6a   :  { %3282 = vmatprep.subr.bf16.mxu0 %v3281_v25 }
 0xa6c   :  { %3081 = vmatmul.mubr.msk.f32.gmra.mrb[38].mxu0 %vm184_vm1, %v3888_v8 }
 0xa6d   :  { %3083 = vmatprep.mubr.msk.f32.mxu0 %vm184_vm1, %v3895_v9  ;;  %3284 = vmatpush3.bf16.msra.mxu0 %v3281_v25 }
 0xa70   :  { %3084 = vmatmul.mubr.msk.f32.gmra.mrb[40].mxu0 %vm184_vm1, %v3902_v12 }
 0xa71   :  { %3086 = vmatprep.mubr.msk.f32.mxu0 %vm184_vm1, %v3909_v15 }
 0xa74   :  { %3087 = vmatmul.mubr.msk.f32.gmra.mrb[42].mxu0 %vm184_vm1, %v3916_v13 }
 0xb3b   :  { %v3079_v24 = vpop.f32.mrb[36].mxu0 }
 0xb3c   :  { %v2166_v33 = vadd.f32 %v3079_v24, %v2093_v23  ;;  %v2160_v7 = vpop.f32.mrb[37].mxu0 }
 0xb3d   :  { %v2161_v32 = vadd.f32 %v2160_v7, %v2093_v23 }
 0xb3e   :  { %v2200_v54 = vmax.f32 %v2166_v33, 0.0 }
 0xb3f   :  { %v2199_v40 = vmax.f32 %v2161_v32, 0.0  ;;  %v3082_v39 = vpop.f32.mrb[38].mxu0 }
 0xb40   :  { %v2176_v55 = vadd.f32 %v3082_v39, %v2093_v23  ;;  %v2170_v2 = vpop.f32.mrb[39].mxu0 }
 0xb41   :  { %v2171_v20 = vadd.f32 %v2170_v2, %v2093_v23  ;;  %3097 = vmatprep.mubr.msk.f32.mxu0 %vm50_vm0, %v2199_v40 }
 0xb42   :  { %3098 = vmatmul.mubr.msk.f32.vlgmr.msra.gmra.mrb[44].mxu0 %vm50_vm0, %v2200_v54  ;;  %v2202_v6 = vmax.f32 %v2176_v55, 0.0 }
 0xb43   :  { %v2201_v46 = vmax.f32 %v2171_v20, 0.0  ;;  %v3085_v19 = vpop.f32.mrb[40].mxu0 }
 0xb44   :  { %v2186_v26 = vadd.f32 %v3085_v19, %v2093_v23  ;;  %v2180_v14 = vpop.f32.mrb[41].mxu0 }
 0xb45   :  { %v2181_v27 = vadd.f32 %v2180_v14, %v2093_v23  ;;  %3100 = vmatprep.mubr.msk.f32.mxu0 %vm50_vm0, %v2201_v46 }
 0xb46   :  { %3101 = vmatmul.mubr.msk.f32.gmra.mrb[46].mxu0 %vm50_vm0, %v2202_v6  ;;  %v2204_v29 = vmax.f32 %v2186_v26, 0.0 }
 0xb47   :  { %v2203_v17 = vmax.f32 %v2181_v27, 0.0  ;;  %v3088_v28 = vpop.f32.mrb[42].mxu0 }
 0xb48   :  { %v2196_v30 = vadd.f32 %v3088_v28, %v2093_v23  ;;  %v2190_v31 = vpop.f32.mrb[43].mxu0 }
 0xb49   :  { %v2191_v34 = vadd.f32 %v2190_v31, %v2093_v23  ;;  %3103 = vmatprep.mubr.msk.f32.mxu0 %vm50_vm0, %v2203_v17 }
 0xb4a   :  { %3104 = vmatmul.mubr.msk.f32.gmra.mrb[48].mxu0 %vm50_vm0, %v2204_v29  ;;  %v2206_v36 = vmax.f32 %v2196_v30, 0.0 }
 0xb4b   :  { %v2205_v35 = vmax.f32 %v2191_v34, 0.0 }
 0xb4d   :  { %3106 = vmatprep.mubr.msk.f32.mxu0 %vm50_vm0, %v2205_v35 }
 0xb4e   :  { %3107 = vmatmul.mubr.msk.f32.gmra.mrb[50].mxu0 %vm50_vm0, %v2206_v36 }
 0xc15   :  { %v3099_v37 = vpop.f32.mrb[44].mxu0 }
 0xc16   :  { %v2297_v43 = vpop.f32.mrb[45].mxu0 }
 0xc17   :  { %v3285_v38 = vpack.c.bf16 %v3099_v37, %v2297_v43 }
 0xc19   :  { %v3102_v42 = vpop.f32.mrb[46].mxu0  ;;  %3286 = vmatprep.subr.bf16.mxu1 %v3285_v38 }
 0xc1a   :  { %v2307_v44 = vpop.f32.mrb[47].mxu0  ;;  %3288 = vmatpush3.bf16.msra.mxu1 %v3285_v38 }
 0xc1b   :  { %v3289_v47 = vpack.c.bf16 %v3102_v42, %v2307_v44 }
 0xc1d   :  { %v3105_v48 = vpop.f32.mrb[48].mxu0  ;;  %3290 = vmatprep.subr.bf16.mxu1 %v3289_v47 }
 0xc1e   :  { %v2317_v50 = vpop.f32.mrb[49].mxu0  ;;  %3292 = vmatpush3.bf16.msra.mxu1 %v3289_v47 }
 0xc1f   :  { %v3293_v51 = vpack.c.bf16 %v3105_v48, %v2317_v50 }
 0xc21   :  { %v3108_v52 = vpop.f32.mrb[50].mxu0  ;;  %3294 = vmatprep.subr.bf16.mxu1 %v3293_v51 }
 0xc22   :  { %v2327_v53 = vpop.f32.mrb[51].mxu0  ;;  %3296 = vmatpush3.bf16.msra.mxu1 %v3293_v51 }
 0xc23   :  { %v3297_v56 = vpack.c.bf16 %v3108_v52, %v2327_v53 }
 0xc25   :  { %3298 = vmatprep.subr.bf16.mxu1 %v3297_v56 }
 0xc26   :  { %3300 = vmatpush3.bf16.msra.mxu1 %v3297_v56 }
 0xc29   :  { %3126 = vmatmul.mubr.msk.f32.vlgmr.msra.gmra.mrb[28].mxu1 %vm184_vm1, %v3874_v49 }
 0xc2a   :  { %3128 = vmatprep.mubr.msk.f32.mxu1 %vm184_vm1, %v3881_v21 }
 0xc2d   :  { %3129 = vmatmul.mubr.msk.f32.gmra.mrb[30].mxu1 %vm184_vm1, %v3888_v8 }
 0xc2e   :  { %3131 = vmatprep.mubr.msk.f32.mxu1 %vm184_vm1, %v3895_v9 }
 0xc31   :  { %3132 = vmatmul.mubr.msk.f32.gmra.mrb[32].mxu1 %vm184_vm1, %v3902_v12 }
 0xc32   :  { %3134 = vmatprep.mubr.msk.f32.mxu1 %vm184_vm1, %v3909_v15 }
 0xc35   :  { %3135 = vmatmul.mubr.msk.f32.gmra.mrb[34].mxu1 %vm184_vm1, %v3916_v13 }
 0xcfc   :  { %v3127_v11 = vpop.f32.mrb[28].mxu1 }
 0xcfd   :  { %v2412_v58 = vadd.f32 %v3127_v11, %v2339_v4  ;;  %v2406_v59 = vpop.f32.mrb[29].mxu1 }
 0xcfe   :  { %v2407_v45 = vadd.f32 %v2406_v59, %v2339_v4 }
 0xcff   :  { %v2446_v32 = vmax.f32 %v2412_v58, 0.0 }
 0xd00   :  { %v3130_v60 = vpop.f32.mrb[30].mxu1  ;;  %v2445_v23 = vmax.f32 %v2407_v45, 0.0 }
 0xd01   :  { %v2422_v61 = vadd.f32 %v3130_v60, %v2339_v4  ;;  %v2416_v62 = vpop.f32.mrb[31].mxu1 }
 0xd02   :  { %v2417_v0 = vadd.f32 %v2416_v62, %v2339_v4 }
 0xd03   :  { %v2448_v63 = vmax.f32 %v2422_v61, 0.0 }
 0xd04   :  { %v3133_v1 = vpop.f32.mrb[32].mxu1  ;;  %v2447_v5 = vmax.f32 %v2417_v0, 0.0 }
 0xd05   :  { %2457 = vrot.lane.b32.xlu0 %v2448_v63, %s3375_s2  ;;  %v2432_v3 = vadd.f32 %v3133_v1, %v2339_v4  ;;  %v2426_v18 = vpop.f32.mrb[33].mxu1 }
 0xd06   :  { %v2427_v21 = vadd.f32 %v2426_v18, %v2339_v4 }
 0xd07   :  { %v2450_v25 = vmax.f32 %v2432_v3, 0.0 }
 0xd08   :  { %v3136_v57 = vpop.f32.mrb[34].mxu1  ;;  %v2449_v12 = vmax.f32 %v2427_v21, 0.0 }
 0xd09   :  { %2455 = vrot.lane.b32.xlu0 %v2447_v5, %s3375_s2  ;;  %v2436_v41 = vpop.f32.mrb[35].mxu1  ;;  %v2442_v9 = vadd.f32 %v3136_v57, %v2339_v4 }
 0xd0a   :  { %v2437_v49 = vadd.f32 %v2436_v41, %v2339_v4 }
 0xd0b   :  { %v2452_v15 = vmax.f32 %v2442_v9, 0.0 }
 0xd0c   :  { %v2451_v8 = vmax.f32 %v2437_v49, 0.0 }
 0xd0d   :  { %2465 = vrot.lane.b32.xlu0 %v2450_v25, %s3376_s4 }
 0xd0e   :  { %2471 = vrot.lane.b32.xlu1 %v2451_v8, %s3377_s8 }
 0xd11   :  { %2463 = vrot.lane.b32.xlu0 %v2449_v12, %s3376_s4 }
 0xd15   :  { %2473 = vrot.lane.b32.xlu0 %v2452_v15, %s3377_s8 }
 0xd77   :  { %v2458_v13 = vpop.permute.xlu0 %2457 }
 0xd78   :  { %v2478_v54 = vsel %vm50_vm0, %v2446_v32, %v2458_v13 }
 0xd7b   :  { %v2456_v16 = vpop.permute.xlu0 %2455 }
 0xd7c   :  { %v2477_v33 = vsel %vm50_vm0, %v2445_v23, %v2456_v16 }
 0xd7f   :  { %v2466_v22 = vpop.permute.xlu0 %2465 }
 0xd80   :  { %v2472_v24 = vpop.permute.xlu1 %2471  ;;  %v2480_v55 = vsel %vm184_vm1, %v2478_v54, %v2466_v22 }
 0xd83   :  { %v2464_v7 = vpop.permute.xlu0 %2463 }
 0xd84   :  { %v2479_v40 = vsel %vm184_vm1, %v2477_v33, %v2464_v7 }
 0xd85   :  { %v2482_v39 = vsel %vm2481_vm6, %v2479_v40, %v2472_v24 }
 0xd86   :  { %2484 = vst [vmem:[%s3962_s5] sm:$0xff] %v2482_v39 }
 0xd87   :  { %v2474_v2 = vpop.permute.xlu0 %2473 }
 0xd88   :  { %v2483_v20 = vsel %vm2481_vm6, %v2480_v55, %v2474_v2 }
 0xd89   :  { %2485 = vst [vmem:[%s3962_s5 + $0x8] sm:$0xff] %v2483_v20 }

</bundles_post_ra>
